<compile_context>
chip_gen: v5e
topology: v5e:2x2
jax: 0.10.0
libtpu: 0.0.40
codegen_flags: <defaults>
</compile_context>

<pallas_src>
import functools
import math

import jax
import jax.numpy as jnp
from jax.experimental import pallas as pl
from jax.experimental.pallas import tpu as pltpu


def _encoder_block_kernel(x_ref, wqkv_ref, g1_ref, b1_ref, w1_ref, c1_ref,
                          w2_ref, c2_ref, g2_ref, b2_ref, o_ref,
                          *, num_heads: int, eps: float):
    Bt, S, D = x_ref.shape
    H = num_heads
    dh = D // H
    T = Bt * S

    x = x_ref[...].reshape(T, D)                        # f32 (T, D)
    x_bf = x.astype(jnp.bfloat16)

    # ---- fused QKV projection: one wide bf16 MXU matmul, f32 accumulate ----
    # (the 1/sqrt(dh) score scale is folded into the Q weights host-side)
    qkv = jnp.dot(x_bf, wqkv_ref[...],
                  preferred_element_type=jnp.float32)   # (T, 3D) f32

    # Head-structured views kept in token-major (Bt, S, H, dh) layout -- no
    # per-head q/k/v transposes; dot_general batch dims do the head batching.
    def heads(y):
        return y.reshape(Bt, S, H, dh).astype(jnp.bfloat16)

    qh = heads(qkv[:, :D])
    kh = heads(qkv[:, D:2 * D])
    vh = heads(qkv[:, 2 * D:])

    # ---- attention (EncoderBlock uses masked=False, so no tril) ----
    # Batch elements are independent; attention is split per element with a
    # static (unrolled) loop so each dot_general carries a single batch dim
    # (H) on the un-transposed layout.
    attn_rows = []
    for b in range(Bt):
        qb, kb, vb = qh[b], kh[b], vh[b]                # (S, H, dh) bf16
        sc = jax.lax.dot_general(                       # (H, Sq, Sk) f32
            qb, kb, (((2,), (2,)), ((1,), (1,))),
            preferred_element_type=jnp.float32)
        mx = jnp.max(sc, axis=-1, keepdims=True)
        ex = jnp.exp(sc - mx)                           # f32, EUP
        prob = ex * pl.reciprocal(jnp.sum(ex, axis=-1, keepdims=True),
                                  approx=True)
        ob = jax.lax.dot_general(                       # (H, Sq, dh) f32
            prob.astype(jnp.bfloat16), vb, (((2,), (0,)), ((0,), (1,))),
            preferred_element_type=jnp.float32)
        # Single remaining relayout: head-major -> token-major concat of heads.
        attn_rows.append(jnp.transpose(ob, (1, 0, 2)).reshape(S, D))
    attn = attn_rows[0] if Bt == 1 else jnp.concatenate(attn_rows, axis=0)

    def layer_norm(y, gamma, beta):                     # all f32
        mu = jnp.mean(y, axis=-1, keepdims=True)
        var = jnp.mean(jnp.square(y - mu), axis=-1, keepdims=True)
        return (y - mu) * jax.lax.rsqrt(var + eps) * gamma + beta

    # ---- AddNorm 1 ----
    h1 = layer_norm(x + attn, g1_ref[...], b1_ref[...])

    # ---- FeedForward (weights pre-transposed host-side, bf16 operands) ----
    f = jnp.dot(h1.astype(jnp.bfloat16), w1_ref[...],
                preferred_element_type=jnp.float32) + c1_ref[...]
    f = jnp.maximum(f, 0.0)
    f = jnp.dot(f.astype(jnp.bfloat16), w2_ref[...],
                preferred_element_type=jnp.float32) + c2_ref[...]

    # ---- AddNorm 2 ----
    out = layer_norm(h1 + f, g2_ref[...], b2_ref[...])
    o_ref[...] = out.reshape(Bt, S, D).astype(o_ref.dtype)


def _default_batch_tile(B: int, S: int) -> int:
    """Pack batch elements per grid step (fill MXU sublanes, amortize per-step
    overhead) while keeping >= 2 'parallel' grid steps for v7x's 2 TCs."""
    bt = 1
    while (B % (bt * 2) == 0) and (B // (bt * 2) >= 2) and (bt * S < 64):
        bt *= 2
    return bt


def _vmem_limit_bytes() -> int:
    try:
        cap = int(pltpu.get_tpu_info().vmem_capacity_bytes)
    except Exception:
        cap = 64 * 1024 * 1024          # conservative (v7x per-TC VMEM)
    return cap * 7 // 8                 # leave headroom for Mosaic internals


def encoder_block(x, wq, wk, wv, g1, b1, w1, c1, w2, c2, g2, b2,
                  *, num_heads: int, eps: float = 1e-5, batch_tile=None):
    """Fused EncoderBlock forward. Weights use PyTorch nn.Linear layout
    (out_features, in_features); layer-norm params are (D,) vectors."""
    B, S, D = x.shape
    assert D % num_heads == 0, "num_heads must evenly chunk d_model"
    dh = D // num_heads
    scale = 1.0 / math.sqrt(dh)

    Bt = _default_batch_tile(B, S) if batch_tile is None else batch_tile
    assert B % Bt == 0, "batch_tile must divide batch"

    # Host-side (one-time) weight prep: fused QKV with the attention scale
    # folded into Wq, all matmul weights pre-transposed and cast to bf16
    # (MXU-native on v5e/v6e/v7x, half the DMA/VMEM); biases / LN params f32.
    w_qkv = jnp.concatenate([wq.T * scale, wk.T, wv.T],
                            axis=1).astype(jnp.bfloat16)          # (D, 3D)
    w1t = w1.T.astype(jnp.bfloat16)                               # (D, D)
    w2t = w2.T.astype(jnp.bfloat16)                               # (D, D)
    row = lambda v: v.reshape(1, D).astype(jnp.float32)           # (1, D) rows

    kernel = functools.partial(_encoder_block_kernel,
                               num_heads=num_heads, eps=eps)

    x_spec = pl.BlockSpec((Bt, S, D), lambda b: (b, 0, 0))
    out_spec = pl.BlockSpec((Bt, S, D), lambda b: (b, 0, 0))

    # Rough per-call cost so XLA schedules surrounding ops around this call.
    cost = pl.CostEstimate(
        flops=B * (10 * S * D * D + 4 * S * S * D),
        transcendentals=B * (num_heads * S * S + 2 * S),
        bytes_accessed=2 * B * S * D * 4 + 5 * D * D * 2 + 6 * D * 4)

    def _call(const_mode):
        if const_mode is None:
            const2d = lambda shape: pl.BlockSpec(shape, lambda b: (0, 0))
        else:
            const2d = lambda shape: pl.BlockSpec(shape, lambda b: (0, 0),
                                                 pipeline_mode=const_mode)
        return pl.pallas_call(
            kernel,
            out_shape=jax.ShapeDtypeStruct((B, S, D), x.dtype),
            grid_spec=pltpu.PrefetchScalarGridSpec(
                num_scalar_prefetch=0,
                grid=(B // Bt,),
                in_specs=[x_spec,
                          const2d((D, 3 * D)),                  # fused QKV
                          const2d((1, D)), const2d((1, D)),     # ln1 gamma/beta
                          const2d((D, D)), const2d((1, D)),     # ffn l1 w/b
                          const2d((D, D)), const2d((1, D)),     # ffn l2 w/b
                          const2d((1, D)), const2d((1, D))],    # ln2 gamma/beta
                out_specs=out_spec,
            ),
            compiler_params=pltpu.CompilerParams(
                dimension_semantics=("parallel",),
                vmem_limit_bytes=_vmem_limit_bytes()),
            cost_estimate=cost,
        )(x, w_qkv, row(g1), row(b1), w1t, row(c1), w2t, row(c2),
          row(g2), row(b2))

    try:
        # Grid-invariant weight/bias blocks: request a single VMEM buffer so
        # the pipeline does not double-buffer constants.
        return _call(pl.Buffered(1))
    except Exception:
        # TODO(synk): pl.Buffered(1) pipeline_mode unsupported on this JAX
        # build; fall back to default double-buffered constant operands.
        return _call(None)


def _reference(x, wq, wk, wv, g1, b1, w1, c1, w2, c2, g2, b2,
               *, num_heads, eps=1e-5):
    # Pure-JAX f32 mirror of the PyTorch EncoderBlock forward (masked=False).
    Q = x @ wq.T
    K = x @ wk.T
    V = x @ wv.T
    D = Q.shape[-1]
    dh = D // num_heads
    outs = []
    for h in range(num_heads):
        sl = slice(h * dh, (h + 1) * dh)
        s = jnp.einsum("bqd,bkd->bqk", Q[..., sl], K[..., sl]) / math.sqrt(dh)
        p = jax.nn.softmax(s, axis=2)
        outs.append(jnp.einsum("bqk,bkd->bqd", p, V[..., sl]))
    attn = jnp.concatenate(outs, axis=2)

    def ln(y, g, b):
        mu = y.mean(axis=-1, keepdims=True)
        var = ((y - mu) ** 2).mean(axis=-1, keepdims=True)
        return (y - mu) / jnp.sqrt(var + eps) * g + b

    h1 = ln(x + attn, g1, b1)
    f = jnp.maximum(h1 @ w1.T + c1, 0.0) @ w2.T + c2
    return ln(h1 + f, g2, b2)


if __name__ == "__main__":
    def make_params(key, D):
        ks = jax.random.split(key, 11)
        bound = 1.0 / math.sqrt(D)
        uni = lambda k, s: jax.random.uniform(k, s, jnp.float32, -bound, bound)
        return dict(
            wq=uni(ks[0], (D, D)), wk=uni(ks[1], (D, D)), wv=uni(ks[2], (D, D)),
            w1=uni(ks[3], (D, D)), c1=uni(ks[4], (D,)),
            w2=uni(ks[5], (D, D)), c2=uni(ks[6], (D,)),
            g1=1.0 + 0.1 * jax.random.normal(ks[7], (D,), jnp.float32),
            b1=0.1 * jax.random.normal(ks[8], (D,), jnp.float32),
            g2=1.0 + 0.1 * jax.random.normal(ks[9], (D,), jnp.float32),
            b2=0.1 * jax.random.normal(ks[10], (D,), jnp.float32))

    def check(B, S, D, num_heads):
        key = jax.random.PRNGKey(0)
        kx, kp = jax.random.split(key)
        x = jax.random.normal(kx, (B, S, D), dtype=jnp.float32)
        p = make_params(kp, D)
        out = encoder_block(x, p["wq"], p["wk"], p["wv"], p["g1"], p["b1"],
                            p["w1"], p["c1"], p["w2"], p["c2"], p["g2"],
                            p["b2"], num_heads=num_heads)
        out = jax.block_until_ready(out)
        ref = _reference(x, p["wq"], p["wk"], p["wv"], p["g1"], p["b1"],
                         p["w1"], p["c1"], p["w2"], p["c2"], p["g2"], p["b2"],
                         num_heads=num_heads)
        assert out.shape == (B, S, D)
        # bf16 MXU operands + approx reciprocal vs f32 reference -> loose tol.
        assert jnp.allclose(out, ref, atol=3e-2, rtol=3e-2), \
            f"mismatch vs reference (B={B}, S={S}, D={D})"

    check(B=2, S=8, D=32, num_heads=4)   # Bt=1, two 'parallel' grid steps
    check(B=8, S=8, D=32, num_heads=4)   # Bt=4 batch elements packed per step

    print("KERNEL_OK")
</pallas_src>

<mosaic_0001>
module attributes {stable_mosaic.version = 11 : i64} {
  func.func @_encoder_block_kernel(%arg0: i32, %arg1: memref<1x8x32xf32, #tpu.memory_space<vmem>>, %arg2: memref<32x96xbf16, #tpu.memory_space<vmem>>, %arg3: memref<1x32xf32, #tpu.memory_space<vmem>>, %arg4: memref<1x32xf32, #tpu.memory_space<vmem>>, %arg5: memref<32x32xbf16, #tpu.memory_space<vmem>>, %arg6: memref<1x32xf32, #tpu.memory_space<vmem>>, %arg7: memref<32x32xbf16, #tpu.memory_space<vmem>>, %arg8: memref<1x32xf32, #tpu.memory_space<vmem>>, %arg9: memref<1x32xf32, #tpu.memory_space<vmem>>, %arg10: memref<1x32xf32, #tpu.memory_space<vmem>>, %arg11: memref<1x8x32xf32, #tpu.memory_space<vmem>>) attributes {dimension_semantics = [#tpu.dimension_semantics<parallel>], iteration_bounds = array<i64: 2>, scalar_prefetch = 0 : i64, scratch_operands = 0 : i64, tpu.core_type = #tpu.core_type<tc>, window_params = [{transform_indices = @transform_0, window_bounds = array<i64: 1, 8, 32>}, {pipeline_mode = #tpu.pipeline_mode<synchronous>, transform_indices = @transform_1, window_bounds = array<i64: 32, 96>}, {pipeline_mode = #tpu.pipeline_mode<synchronous>, transform_indices = @transform_2, window_bounds = array<i64: 1, 32>}, {pipeline_mode = #tpu.pipeline_mode<synchronous>, transform_indices = @transform_3, window_bounds = array<i64: 1, 32>}, {pipeline_mode = #tpu.pipeline_mode<synchronous>, transform_indices = @transform_4, window_bounds = array<i64: 32, 32>}, {pipeline_mode = #tpu.pipeline_mode<synchronous>, transform_indices = @transform_5, window_bounds = array<i64: 1, 32>}, {pipeline_mode = #tpu.pipeline_mode<synchronous>, transform_indices = @transform_6, window_bounds = array<i64: 32, 32>}, {pipeline_mode = #tpu.pipeline_mode<synchronous>, transform_indices = @transform_7, window_bounds = array<i64: 1, 32>}, {pipeline_mode = #tpu.pipeline_mode<synchronous>, transform_indices = @transform_8, window_bounds = array<i64: 1, 32>}, {pipeline_mode = #tpu.pipeline_mode<synchronous>, transform_indices = @transform_9, window_bounds = array<i64: 1, 32>}, {transform_indices = @transform_10, window_bounds = array<i64: 1, 8, 32>}]} {
    %c0 = arith.constant 0 : index
    %c0_0 = arith.constant 0 : index
    %c0_1 = arith.constant 0 : index
    %0 = vector.load %arg1[%c0, %c0_0, %c0_1] : memref<1x8x32xf32, #tpu.memory_space<vmem>>, vector<1x8x32xf32>
    %1 = vector.shape_cast %0 : vector<1x8x32xf32> to vector<8x32xf32>
    %2 = arith.truncf %1 : vector<8x32xf32> to vector<8x32xbf16>
    %c0_2 = arith.constant 0 : index
    %c0_3 = arith.constant 0 : index
    %3 = vector.load %arg2[%c0_2, %c0_3] : memref<32x96xbf16, #tpu.memory_space<vmem>>, vector<32x96xbf16>
    %cst = arith.constant dense<0.000000e+00> : vector<8x96xf32>
    %4 = tpu.matmul %2, %3, %cst {dimension_numbers = #tpu.dot_dimension_numbers<[1], [0], [0], [1], [0, 0, 1, 1], [], []>} : vector<8x32xbf16>, vector<32x96xbf16>, vector<8x96xf32> -> vector<8x96xf32>
    %5 = vector.extract_strided_slice %4 {offsets = [0, 0], sizes = [8, 32], strides = [1, 1]} : vector<8x96xf32> to vector<8x32xf32>
    %6 = vector.shape_cast %5 : vector<8x32xf32> to vector<1x8x4x8xf32>
    %7 = arith.truncf %6 : vector<1x8x4x8xf32> to vector<1x8x4x8xbf16>
    %8 = vector.extract_strided_slice %4 {offsets = [0, 32], sizes = [8, 32], strides = [1, 1]} : vector<8x96xf32> to vector<8x32xf32>
    %9 = vector.shape_cast %8 : vector<8x32xf32> to vector<1x8x4x8xf32>
    %10 = arith.truncf %9 : vector<1x8x4x8xf32> to vector<1x8x4x8xbf16>
    %11 = vector.extract_strided_slice %4 {offsets = [0, 64], sizes = [8, 32], strides = [1, 1]} : vector<8x96xf32> to vector<8x32xf32>
    %12 = vector.shape_cast %11 : vector<8x32xf32> to vector<1x8x4x8xf32>
    %13 = arith.truncf %12 : vector<1x8x4x8xf32> to vector<1x8x4x8xbf16>
    %14 = vector.shape_cast %7 : vector<1x8x4x8xbf16> to vector<8x4x8xbf16>
    %15 = vector.shape_cast %10 : vector<1x8x4x8xbf16> to vector<8x4x8xbf16>
    %16 = vector.shape_cast %13 : vector<1x8x4x8xbf16> to vector<8x4x8xbf16>
    %cst_4 = arith.constant dense<0.000000e+00> : vector<4x8x8xf32>
    %17 = tpu.matmul %14, %15, %cst_4 {dimension_numbers = #tpu.dot_dimension_numbers<[2], [2], [0], [0], [0, 1, 0, 0, 1, 0], [1], [1]>} : vector<8x4x8xbf16>, vector<8x4x8xbf16>, vector<4x8x8xf32> -> vector<4x8x8xf32>
    %cst_5 = arith.constant dense<0xFF800000> : vector<4x8xf32>
    %18 = vector.multi_reduction <maximumf>, %17, %cst_5 [2] : vector<4x8x8xf32> to vector<4x8xf32>
    %19 = vector.shape_cast %18 : vector<4x8xf32> to vector<4x8x1xf32>
    %20 = vector.broadcast %19 : vector<4x8x1xf32> to vector<4x8x8xf32>
    %21 = arith.subf %17, %20 : vector<4x8x8xf32>
    %22 = math.exp %21 : vector<4x8x8xf32>
    %cst_6 = arith.constant dense<0.000000e+00> : vector<4x8xf32>
    %23 = vector.multi_reduction <add>, %22, %cst_6 [2] : vector<4x8x8xf32> to vector<4x8xf32>
    %24 = vector.shape_cast %23 : vector<4x8xf32> to vector<4x8x1xf32>
    %25 = tpu.reciprocal %24 {approx = true} : vector<4x8x1xf32> -> vector<4x8x1xf32>
    %26 = vector.broadcast %25 : vector<4x8x1xf32> to vector<4x8x8xf32>
    %27 = arith.mulf %22, %26 : vector<4x8x8xf32>
    %28 = arith.truncf %27 : vector<4x8x8xf32> to vector<4x8x8xbf16>
    %cst_7 = arith.constant dense<0.000000e+00> : vector<4x8x8xf32>
    %29 = tpu.matmul %28, %16, %cst_7 {dimension_numbers = #tpu.dot_dimension_numbers<[2], [0], [1], [2], [0, 0, 0, 1, 1, 2], [0], [1]>} : vector<4x8x8xbf16>, vector<8x4x8xbf16>, vector<4x8x8xf32> -> vector<4x8x8xf32>
    %30 = tpu.transpose %29, [1, 0, 2] : vector<4x8x8xf32> -> vector<8x4x8xf32>
    %31 = vector.shape_cast %30 : vector<8x4x8xf32> to vector<8x32xf32>
    %32 = arith.addf %1, %31 : vector<8x32xf32>
    %c0_8 = arith.constant 0 : index
    %c0_9 = arith.constant 0 : index
    %33 = vector.load %arg3[%c0_8, %c0_9] : memref<1x32xf32, #tpu.memory_space<vmem>>, vector<1x32xf32>
    %c0_10 = arith.constant 0 : index
    %c0_11 = arith.constant 0 : index
    %34 = vector.load %arg4[%c0_10, %c0_11] : memref<1x32xf32, #tpu.memory_space<vmem>>, vector<1x32xf32>
    %cst_12 = arith.constant dense<0.000000e+00> : vector<8xf32>
    %35 = vector.multi_reduction <add>, %32, %cst_12 [1] : vector<8x32xf32> to vector<8xf32>
    %36 = vector.shape_cast %35 : vector<8xf32> to vector<8x1xf32>
    %cst_13 = arith.constant 3.200000e+01 : f32
    %37 = vector.broadcast %cst_13 : f32 to vector<8x1xf32>
    %38 = arith.divf %36, %37 : vector<8x1xf32>
    %39 = vector.broadcast %38 : vector<8x1xf32> to vector<8x32xf32>
    %40 = arith.subf %32, %39 : vector<8x32xf32>
    %41 = arith.mulf %40, %40 : vector<8x32xf32>
    %cst_14 = arith.constant dense<0.000000e+00> : vector<8xf32>
    %42 = vector.multi_reduction <add>, %41, %cst_14 [1] : vector<8x32xf32> to vector<8xf32>
    %43 = vector.shape_cast %42 : vector<8xf32> to vector<8x1xf32>
    %cst_15 = arith.constant 3.200000e+01 : f32
    %44 = vector.broadcast %cst_15 : f32 to vector<8x1xf32>
    %45 = arith.divf %43, %44 : vector<8x1xf32>
    %46 = vector.broadcast %38 : vector<8x1xf32> to vector<8x32xf32>
    %47 = arith.subf %32, %46 : vector<8x32xf32>
    %cst_16 = arith.constant 9.99999974E-6 : f32
    %48 = vector.broadcast %cst_16 : f32 to vector<8x1xf32>
    %49 = arith.addf %45, %48 : vector<8x1xf32>
    %50 = math.rsqrt %49 : vector<8x1xf32>
    %51 = vector.broadcast %50 : vector<8x1xf32> to vector<8x32xf32>
    %52 = arith.mulf %47, %51 : vector<8x32xf32>
    %53 = vector.broadcast %33 : vector<1x32xf32> to vector<8x32xf32>
    %54 = arith.mulf %52, %53 : vector<8x32xf32>
    %55 = vector.broadcast %34 : vector<1x32xf32> to vector<8x32xf32>
    %56 = arith.addf %54, %55 : vector<8x32xf32>
    %57 = arith.truncf %56 : vector<8x32xf32> to vector<8x32xbf16>
    %c0_17 = arith.constant 0 : index
    %c0_18 = arith.constant 0 : index
    %58 = vector.load %arg5[%c0_17, %c0_18] : memref<32x32xbf16, #tpu.memory_space<vmem>>, vector<32x32xbf16>
    %cst_19 = arith.constant dense<0.000000e+00> : vector<8x32xf32>
    %59 = tpu.matmul %57, %58, %cst_19 {dimension_numbers = #tpu.dot_dimension_numbers<[1], [0], [0], [1], [0, 0, 1, 1], [], []>} : vector<8x32xbf16>, vector<32x32xbf16>, vector<8x32xf32> -> vector<8x32xf32>
    %c0_20 = arith.constant 0 : index
    %c0_21 = arith.constant 0 : index
    %60 = vector.load %arg6[%c0_20, %c0_21] : memref<1x32xf32, #tpu.memory_space<vmem>>, vector<1x32xf32>
    %61 = vector.broadcast %60 : vector<1x32xf32> to vector<8x32xf32>
    %62 = arith.addf %59, %61 : vector<8x32xf32>
    %cst_22 = arith.constant 0.000000e+00 : f32
    %63 = vector.broadcast %cst_22 : f32 to vector<8x32xf32>
    %64 = arith.maximumf %62, %63 : vector<8x32xf32>
    %65 = arith.truncf %64 : vector<8x32xf32> to vector<8x32xbf16>
    %c0_23 = arith.constant 0 : index
    %c0_24 = arith.constant 0 : index
    %66 = vector.load %arg7[%c0_23, %c0_24] : memref<32x32xbf16, #tpu.memory_space<vmem>>, vector<32x32xbf16>
    %cst_25 = arith.constant dense<0.000000e+00> : vector<8x32xf32>
    %67 = tpu.matmul %65, %66, %cst_25 {dimension_numbers = #tpu.dot_dimension_numbers<[1], [0], [0], [1], [0, 0, 1, 1], [], []>} : vector<8x32xbf16>, vector<32x32xbf16>, vector<8x32xf32> -> vector<8x32xf32>
    %c0_26 = arith.constant 0 : index
    %c0_27 = arith.constant 0 : index
    %68 = vector.load %arg8[%c0_26, %c0_27] : memref<1x32xf32, #tpu.memory_space<vmem>>, vector<1x32xf32>
    %69 = vector.broadcast %68 : vector<1x32xf32> to vector<8x32xf32>
    %70 = arith.addf %67, %69 : vector<8x32xf32>
    %71 = arith.addf %56, %70 : vector<8x32xf32>
    %c0_28 = arith.constant 0 : index
    %c0_29 = arith.constant 0 : index
    %72 = vector.load %arg9[%c0_28, %c0_29] : memref<1x32xf32, #tpu.memory_space<vmem>>, vector<1x32xf32>
    %c0_30 = arith.constant 0 : index
    %c0_31 = arith.constant 0 : index
    %73 = vector.load %arg10[%c0_30, %c0_31] : memref<1x32xf32, #tpu.memory_space<vmem>>, vector<1x32xf32>
    %cst_32 = arith.constant dense<0.000000e+00> : vector<8xf32>
    %74 = vector.multi_reduction <add>, %71, %cst_32 [1] : vector<8x32xf32> to vector<8xf32>
    %75 = vector.shape_cast %74 : vector<8xf32> to vector<8x1xf32>
    %cst_33 = arith.constant 3.200000e+01 : f32
    %76 = vector.broadcast %cst_33 : f32 to vector<8x1xf32>
    %77 = arith.divf %75, %76 : vector<8x1xf32>
    %78 = vector.broadcast %77 : vector<8x1xf32> to vector<8x32xf32>
    %79 = arith.subf %71, %78 : vector<8x32xf32>
    %80 = arith.mulf %79, %79 : vector<8x32xf32>
    %cst_34 = arith.constant dense<0.000000e+00> : vector<8xf32>
    %81 = vector.multi_reduction <add>, %80, %cst_34 [1] : vector<8x32xf32> to vector<8xf32>
    %82 = vector.shape_cast %81 : vector<8xf32> to vector<8x1xf32>
    %cst_35 = arith.constant 3.200000e+01 : f32
    %83 = vector.broadcast %cst_35 : f32 to vector<8x1xf32>
    %84 = arith.divf %82, %83 : vector<8x1xf32>
    %85 = vector.broadcast %77 : vector<8x1xf32> to vector<8x32xf32>
    %86 = arith.subf %71, %85 : vector<8x32xf32>
    %cst_36 = arith.constant 9.99999974E-6 : f32
    %87 = vector.broadcast %cst_36 : f32 to vector<8x1xf32>
    %88 = arith.addf %84, %87 : vector<8x1xf32>
    %89 = math.rsqrt %88 : vector<8x1xf32>
    %90 = vector.broadcast %89 : vector<8x1xf32> to vector<8x32xf32>
    %91 = arith.mulf %86, %90 : vector<8x32xf32>
    %92 = vector.broadcast %72 : vector<1x32xf32> to vector<8x32xf32>
    %93 = arith.mulf %91, %92 : vector<8x32xf32>
    %94 = vector.broadcast %73 : vector<1x32xf32> to vector<8x32xf32>
    %95 = arith.addf %93, %94 : vector<8x32xf32>
    %96 = vector.shape_cast %95 : vector<8x32xf32> to vector<1x8x32xf32>
    %c0_37 = arith.constant 0 : index
    %c0_38 = arith.constant 0 : index
    %c0_39 = arith.constant 0 : index
    %97 = vector.load %arg11[%c0_37, %c0_38, %c0_39] : memref<1x8x32xf32, #tpu.memory_space<vmem>>, vector<1x8x32xf32>
    tpu.vector_store %arg11[%c0_37, %c0_38, %c0_39], %96 {strides = array<i32>} : memref<1x8x32xf32, #tpu.memory_space<vmem>>, vector<1x8x32xf32>,
    return
  }
  func.func @transform_0(%arg0: i32) -> (i32, i32, i32) {
    %c0_i32 = arith.constant 0 : i32
    %c0_i32_0 = arith.constant 0 : i32
    %c0_i32_1 = arith.constant 0 : i32
    return %arg0, %c0_i32, %c0_i32_0 : i32, i32, i32
  }
  func.func @transform_1(%arg0: i32) -> (i32, i32) {
    %c0_i32 = arith.constant 0 : i32
    %c0_i32_0 = arith.constant 0 : i32
    %c0_i32_1 = arith.constant 0 : i32
    return %c0_i32, %c0_i32_0 : i32, i32
  }
  func.func @transform_2(%arg0: i32) -> (i32, i32) {
    %c0_i32 = arith.constant 0 : i32
    %c0_i32_0 = arith.constant 0 : i32
    %c0_i32_1 = arith.constant 0 : i32
    return %c0_i32, %c0_i32_0 : i32, i32
  }
  func.func @transform_3(%arg0: i32) -> (i32, i32) {
    %c0_i32 = arith.constant 0 : i32
    %c0_i32_0 = arith.constant 0 : i32
    %c0_i32_1 = arith.constant 0 : i32
    return %c0_i32, %c0_i32_0 : i32, i32
  }
  func.func @transform_4(%arg0: i32) -> (i32, i32) {
    %c0_i32 = arith.constant 0 : i32
    %c0_i32_0 = arith.constant 0 : i32
    %c0_i32_1 = arith.constant 0 : i32
    return %c0_i32, %c0_i32_0 : i32, i32
  }
  func.func @transform_5(%arg0: i32) -> (i32, i32) {
    %c0_i32 = arith.constant 0 : i32
    %c0_i32_0 = arith.constant 0 : i32
    %c0_i32_1 = arith.constant 0 : i32
    return %c0_i32, %c0_i32_0 : i32, i32
  }
  func.func @transform_6(%arg0: i32) -> (i32, i32) {
    %c0_i32 = arith.constant 0 : i32
    %c0_i32_0 = arith.constant 0 : i32
    %c0_i32_1 = arith.constant 0 : i32
    return %c0_i32, %c0_i32_0 : i32, i32
  }
  func.func @transform_7(%arg0: i32) -> (i32, i32) {
    %c0_i32 = arith.constant 0 : i32
    %c0_i32_0 = arith.constant 0 : i32
    %c0_i32_1 = arith.constant 0 : i32
    return %c0_i32, %c0_i32_0 : i32, i32
  }
  func.func @transform_8(%arg0: i32) -> (i32, i32) {
    %c0_i32 = arith.constant 0 : i32
    %c0_i32_0 = arith.constant 0 : i32
    %c0_i32_1 = arith.constant 0 : i32
    return %c0_i32, %c0_i32_0 : i32, i32
  }
  func.func @transform_9(%arg0: i32) -> (i32, i32) {
    %c0_i32 = arith.constant 0 : i32
    %c0_i32_0 = arith.constant 0 : i32
    %c0_i32_1 = arith.constant 0 : i32
    return %c0_i32, %c0_i32_0 : i32, i32
  }
  func.func @transform_10(%arg0: i32) -> (i32, i32, i32) {
    %c0_i32 = arith.constant 0 : i32
    %c0_i32_0 = arith.constant 0 : i32
    %c0_i32_1 = arith.constant 0 : i32
    return %arg0, %c0_i32, %c0_i32_0 : i32, i32, i32
  }
}

module attributes {stable_mosaic.version = 11 : i64} {
  func.func @_encoder_block_kernel(%arg0: i32, %arg1: memref<1x8x32xf32, #tpu.memory_space<vmem>>, %arg2: memref<32x96xbf16, #tpu.memory_space<vmem>>, %arg3: memref<1x32xf32, #tpu.memory_space<vmem>>, %arg4: memref<1x32xf32, #tpu.memory_space<vmem>>, %arg5: memref<32x32xbf16, #tpu.memory_space<vmem>>, %arg6: memref<1x32xf32, #tpu.memory_space<vmem>>, %arg7: memref<32x32xbf16, #tpu.memory_space<vmem>>, %arg8: memref<1x32xf32, #tpu.memory_space<vmem>>, %arg9: memref<1x32xf32, #tpu.memory_space<vmem>>, %arg10: memref<1x32xf32, #tpu.memory_space<vmem>>, %arg11: memref<1x8x32xf32, #tpu.memory_space<vmem>>) attributes {dimension_semantics = [#tpu.dimension_semantics<parallel>], iteration_bounds = array<i64: 2>, scalar_prefetch = 0 : i64, scratch_operands = 0 : i64, tpu.core_type = #tpu.core_type<tc>, window_params = [{transform_indices = @transform_0, window_bounds = array<i64: 1, 8, 32>}, {pipeline_mode = #tpu.pipeline_mode<synchronous>, transform_indices = @transform_1, window_bounds = array<i64: 32, 96>}, {pipeline_mode = #tpu.pipeline_mode<synchronous>, transform_indices = @transform_2, window_bounds = array<i64: 1, 32>}, {pipeline_mode = #tpu.pipeline_mode<synchronous>, transform_indices = @transform_3, window_bounds = array<i64: 1, 32>}, {pipeline_mode = #tpu.pipeline_mode<synchronous>, transform_indices = @transform_4, window_bounds = array<i64: 32, 32>}, {pipeline_mode = #tpu.pipeline_mode<synchronous>, transform_indices = @transform_5, window_bounds = array<i64: 1, 32>}, {pipeline_mode = #tpu.pipeline_mode<synchronous>, transform_indices = @transform_6, window_bounds = array<i64: 32, 32>}, {pipeline_mode = #tpu.pipeline_mode<synchronous>, transform_indices = @transform_7, window_bounds = array<i64: 1, 32>}, {pipeline_mode = #tpu.pipeline_mode<synchronous>, transform_indices = @transform_8, window_bounds = array<i64: 1, 32>}, {pipeline_mode = #tpu.pipeline_mode<synchronous>, transform_indices = @transform_9, window_bounds = array<i64: 1, 32>}, {transform_indices = @transform_10, window_bounds = array<i64: 1, 8, 32>}]} {
    %c0 = arith.constant 0 : index
    %c0_0 = arith.constant 0 : index
    %c0_1 = arith.constant 0 : index
    %0 = vector.load %arg1[%c0, %c0_0, %c0_1] : memref<1x8x32xf32, #tpu.memory_space<vmem>>, vector<1x8x32xf32>
    %1 = vector.shape_cast %0 : vector<1x8x32xf32> to vector<8x32xf32>
    %2 = arith.truncf %1 : vector<8x32xf32> to vector<8x32xbf16>
    %c0_2 = arith.constant 0 : index
    %c0_3 = arith.constant 0 : index
    %3 = vector.load %arg2[%c0_2, %c0_3] : memref<32x96xbf16, #tpu.memory_space<vmem>>, vector<32x96xbf16>
    %cst = arith.constant dense<0.000000e+00> : vector<8x96xf32>
    %4 = tpu.matmul %2, %3, %cst {dimension_numbers = #tpu.dot_dimension_numbers<[1], [0], [0], [1], [0, 0, 1, 1], [], []>} : vector<8x32xbf16>, vector<32x96xbf16>, vector<8x96xf32> -> vector<8x96xf32>
    %5 = vector.extract_strided_slice %4 {offsets = [0, 0], sizes = [8, 32], strides = [1, 1]} : vector<8x96xf32> to vector<8x32xf32>
    %6 = vector.shape_cast %5 : vector<8x32xf32> to vector<1x8x4x8xf32>
    %7 = arith.truncf %6 : vector<1x8x4x8xf32> to vector<1x8x4x8xbf16>
    %8 = vector.extract_strided_slice %4 {offsets = [0, 32], sizes = [8, 32], strides = [1, 1]} : vector<8x96xf32> to vector<8x32xf32>
    %9 = vector.shape_cast %8 : vector<8x32xf32> to vector<1x8x4x8xf32>
    %10 = arith.truncf %9 : vector<1x8x4x8xf32> to vector<1x8x4x8xbf16>
    %11 = vector.extract_strided_slice %4 {offsets = [0, 64], sizes = [8, 32], strides = [1, 1]} : vector<8x96xf32> to vector<8x32xf32>
    %12 = vector.shape_cast %11 : vector<8x32xf32> to vector<1x8x4x8xf32>
    %13 = arith.truncf %12 : vector<1x8x4x8xf32> to vector<1x8x4x8xbf16>
    %14 = vector.shape_cast %7 : vector<1x8x4x8xbf16> to vector<8x4x8xbf16>
    %15 = vector.shape_cast %10 : vector<1x8x4x8xbf16> to vector<8x4x8xbf16>
    %16 = vector.shape_cast %13 : vector<1x8x4x8xbf16> to vector<8x4x8xbf16>
    %cst_4 = arith.constant dense<0.000000e+00> : vector<4x8x8xf32>
    %17 = tpu.matmul %14, %15, %cst_4 {dimension_numbers = #tpu.dot_dimension_numbers<[2], [2], [0], [0], [0, 1, 0, 0, 1, 0], [1], [1]>} : vector<8x4x8xbf16>, vector<8x4x8xbf16>, vector<4x8x8xf32> -> vector<4x8x8xf32>
    %cst_5 = arith.constant dense<0xFF800000> : vector<4x8xf32>
    %18 = vector.multi_reduction <maximumf>, %17, %cst_5 [2] : vector<4x8x8xf32> to vector<4x8xf32>
    %19 = vector.shape_cast %18 : vector<4x8xf32> to vector<4x8x1xf32>
    %20 = vector.broadcast %19 : vector<4x8x1xf32> to vector<4x8x8xf32>
    %21 = arith.subf %17, %20 : vector<4x8x8xf32>
    %22 = math.exp %21 : vector<4x8x8xf32>
    %cst_6 = arith.constant dense<0.000000e+00> : vector<4x8xf32>
    %23 = vector.multi_reduction <add>, %22, %cst_6 [2] : vector<4x8x8xf32> to vector<4x8xf32>
    %24 = vector.shape_cast %23 : vector<4x8xf32> to vector<4x8x1xf32>
    %25 = tpu.reciprocal %24 {approx = true} : vector<4x8x1xf32> -> vector<4x8x1xf32>
    %26 = vector.broadcast %25 : vector<4x8x1xf32> to vector<4x8x8xf32>
    %27 = arith.mulf %22, %26 : vector<4x8x8xf32>
    %28 = arith.truncf %27 : vector<4x8x8xf32> to vector<4x8x8xbf16>
    %cst_7 = arith.constant dense<0.000000e+00> : vector<4x8x8xf32>
    %29 = tpu.matmul %28, %16, %cst_7 {dimension_numbers = #tpu.dot_dimension_numbers<[2], [0], [1], [2], [0, 0, 0, 1, 1, 2], [0], [1]>} : vector<4x8x8xbf16>, vector<8x4x8xbf16>, vector<4x8x8xf32> -> vector<4x8x8xf32>
    %30 = tpu.transpose %29, [1, 0, 2] : vector<4x8x8xf32> -> vector<8x4x8xf32>
    %31 = vector.shape_cast %30 : vector<8x4x8xf32> to vector<8x32xf32>
    %32 = arith.addf %1, %31 : vector<8x32xf32>
    %c0_8 = arith.constant 0 : index
    %c0_9 = arith.constant 0 : index
    %33 = vector.load %arg3[%c0_8, %c0_9] : memref<1x32xf32, #tpu.memory_space<vmem>>, vector<1x32xf32>
    %c0_10 = arith.constant 0 : index
    %c0_11 = arith.constant 0 : index
    %34 = vector.load %arg4[%c0_10, %c0_11] : memref<1x32xf32, #tpu.memory_space<vmem>>, vector<1x32xf32>
    %cst_12 = arith.constant dense<0.000000e+00> : vector<8xf32>
    %35 = vector.multi_reduction <add>, %32, %cst_12 [1] : vector<8x32xf32> to vector<8xf32>
    %36 = vector.shape_cast %35 : vector<8xf32> to vector<8x1xf32>
    %cst_13 = arith.constant 3.200000e+01 : f32
    %37 = vector.broadcast %cst_13 : f32 to vector<8x1xf32>
    %38 = arith.divf %36, %37 : vector<8x1xf32>
    %39 = vector.broadcast %38 : vector<8x1xf32> to vector<8x32xf32>
    %40 = arith.subf %32, %39 : vector<8x32xf32>
    %41 = arith.mulf %40, %40 : vector<8x32xf32>
    %cst_14 = arith.constant dense<0.000000e+00> : vector<8xf32>
    %42 = vector.multi_reduction <add>, %41, %cst_14 [1] : vector<8x32xf32> to vector<8xf32>
    %43 = vector.shape_cast %42 : vector<8xf32> to vector<8x1xf32>
    %cst_15 = arith.constant 3.200000e+01 : f32
    %44 = vector.broadcast %cst_15 : f32 to vector<8x1xf32>
    %45 = arith.divf %43, %44 : vector<8x1xf32>
    %46 = vector.broadcast %38 : vector<8x1xf32> to vector<8x32xf32>
    %47 = arith.subf %32, %46 : vector<8x32xf32>
    %cst_16 = arith.constant 9.99999974E-6 : f32
    %48 = vector.broadcast %cst_16 : f32 to vector<8x1xf32>
    %49 = arith.addf %45, %48 : vector<8x1xf32>
    %50 = math.rsqrt %49 : vector<8x1xf32>
    %51 = vector.broadcast %50 : vector<8x1xf32> to vector<8x32xf32>
    %52 = arith.mulf %47, %51 : vector<8x32xf32>
    %53 = vector.broadcast %33 : vector<1x32xf32> to vector<8x32xf32>
    %54 = arith.mulf %52, %53 : vector<8x32xf32>
    %55 = vector.broadcast %34 : vector<1x32xf32> to vector<8x32xf32>
    %56 = arith.addf %54, %55 : vector<8x32xf32>
    %57 = arith.truncf %56 : vector<8x32xf32> to vector<8x32xbf16>
    %c0_17 = arith.constant 0 : index
    %c0_18 = arith.constant 0 : index
    %58 = vector.load %arg5[%c0_17, %c0_18] : memref<32x32xbf16, #tpu.memory_space<vmem>>, vector<32x32xbf16>
    %cst_19 = arith.constant dense<0.000000e+00> : vector<8x32xf32>
    %59 = tpu.matmul %57, %58, %cst_19 {dimension_numbers = #tpu.dot_dimension_numbers<[1], [0], [0], [1], [0, 0, 1, 1], [], []>} : vector<8x32xbf16>, vector<32x32xbf16>, vector<8x32xf32> -> vector<8x32xf32>
    %c0_20 = arith.constant 0 : index
    %c0_21 = arith.constant 0 : index
    %60 = vector.load %arg6[%c0_20, %c0_21] : memref<1x32xf32, #tpu.memory_space<vmem>>, vector<1x32xf32>
    %61 = vector.broadcast %60 : vector<1x32xf32> to vector<8x32xf32>
    %62 = arith.addf %59, %61 : vector<8x32xf32>
    %cst_22 = arith.constant 0.000000e+00 : f32
    %63 = vector.broadcast %cst_22 : f32 to vector<8x32xf32>
    %64 = arith.maximumf %62, %63 : vector<8x32xf32>
    %65 = arith.truncf %64 : vector<8x32xf32> to vector<8x32xbf16>
    %c0_23 = arith.constant 0 : index
    %c0_24 = arith.constant 0 : index
    %66 = vector.load %arg7[%c0_23, %c0_24] : memref<32x32xbf16, #tpu.memory_space<vmem>>, vector<32x32xbf16>
    %cst_25 = arith.constant dense<0.000000e+00> : vector<8x32xf32>
    %67 = tpu.matmul %65, %66, %cst_25 {dimension_numbers = #tpu.dot_dimension_numbers<[1], [0], [0], [1], [0, 0, 1, 1], [], []>} : vector<8x32xbf16>, vector<32x32xbf16>, vector<8x32xf32> -> vector<8x32xf32>
    %c0_26 = arith.constant 0 : index
    %c0_27 = arith.constant 0 : index
    %68 = vector.load %arg8[%c0_26, %c0_27] : memref<1x32xf32, #tpu.memory_space<vmem>>, vector<1x32xf32>
    %69 = vector.broadcast %68 : vector<1x32xf32> to vector<8x32xf32>
    %70 = arith.addf %67, %69 : vector<8x32xf32>
    %71 = arith.addf %56, %70 : vector<8x32xf32>
    %c0_28 = arith.constant 0 : index
    %c0_29 = arith.constant 0 : index
    %72 = vector.load %arg9[%c0_28, %c0_29] : memref<1x32xf32, #tpu.memory_space<vmem>>, vector<1x32xf32>
    %c0_30 = arith.constant 0 : index
    %c0_31 = arith.constant 0 : index
    %73 = vector.load %arg10[%c0_30, %c0_31] : memref<1x32xf32, #tpu.memory_space<vmem>>, vector<1x32xf32>
    %cst_32 = arith.constant dense<0.000000e+00> : vector<8xf32>
    %74 = vector.multi_reduction <add>, %71, %cst_32 [1] : vector<8x32xf32> to vector<8xf32>
    %75 = vector.shape_cast %74 : vector<8xf32> to vector<8x1xf32>
    %cst_33 = arith.constant 3.200000e+01 : f32
    %76 = vector.broadcast %cst_33 : f32 to vector<8x1xf32>
    %77 = arith.divf %75, %76 : vector<8x1xf32>
    %78 = vector.broadcast %77 : vector<8x1xf32> to vector<8x32xf32>
    %79 = arith.subf %71, %78 : vector<8x32xf32>
    %80 = arith.mulf %79, %79 : vector<8x32xf32>
    %cst_34 = arith.constant dense<0.000000e+00> : vector<8xf32>
    %81 = vector.multi_reduction <add>, %80, %cst_34 [1] : vector<8x32xf32> to vector<8xf32>
    %82 = vector.shape_cast %81 : vector<8xf32> to vector<8x1xf32>
    %cst_35 = arith.constant 3.200000e+01 : f32
    %83 = vector.broadcast %cst_35 : f32 to vector<8x1xf32>
    %84 = arith.divf %82, %83 : vector<8x1xf32>
    %85 = vector.broadcast %77 : vector<8x1xf32> to vector<8x32xf32>
    %86 = arith.subf %71, %85 : vector<8x32xf32>
    %cst_36 = arith.constant 9.99999974E-6 : f32
    %87 = vector.broadcast %cst_36 : f32 to vector<8x1xf32>
    %88 = arith.addf %84, %87 : vector<8x1xf32>
    %89 = math.rsqrt %88 : vector<8x1xf32>
    %90 = vector.broadcast %89 : vector<8x1xf32> to vector<8x32xf32>
    %91 = arith.mulf %86, %90 : vector<8x32xf32>
    %92 = vector.broadcast %72 : vector<1x32xf32> to vector<8x32xf32>
    %93 = arith.mulf %91, %92 : vector<8x32xf32>
    %94 = vector.broadcast %73 : vector<1x32xf32> to vector<8x32xf32>
    %95 = arith.addf %93, %94 : vector<8x32xf32>
    %96 = vector.shape_cast %95 : vector<8x32xf32> to vector<1x8x32xf32>
    %c0_37 = arith.constant 0 : index
    %c0_38 = arith.constant 0 : index
    %c0_39 = arith.constant 0 : index
    %97 = vector.load %arg11[%c0_37, %c0_38, %c0_39] : memref<1x8x32xf32, #tpu.memory_space<vmem>>, vector<1x8x32xf32>
    tpu.vector_store %arg11[%c0_37, %c0_38, %c0_39], %96 {strides = array<i32>} : memref<1x8x32xf32, #tpu.memory_space<vmem>>, vector<1x8x32xf32>,
    return
  }
  func.func @transform_0(%arg0: i32) -> (i32, i32, i32) {
    %c0_i32 = arith.constant 0 : i32
    %c0_i32_0 = arith.constant 0 : i32
    %c0_i32_1 = arith.constant 0 : i32
    return %arg0, %c0_i32, %c0_i32_0 : i32, i32, i32
  }
  func.func @transform_1(%arg0: i32) -> (i32, i32) {
    %c0_i32 = arith.constant 0 : i32
    %c0_i32_0 = arith.constant 0 : i32
    %c0_i32_1 = arith.constant 0 : i32
    return %c0_i32, %c0_i32_0 : i32, i32
  }
  func.func @transform_2(%arg0: i32) -> (i32, i32) {
    %c0_i32 = arith.constant 0 : i32
    %c0_i32_0 = arith.constant 0 : i32
    %c0_i32_1 = arith.constant 0 : i32
    return %c0_i32, %c0_i32_0 : i32, i32
  }
  func.func @transform_3(%arg0: i32) -> (i32, i32) {
    %c0_i32 = arith.constant 0 : i32
    %c0_i32_0 = arith.constant 0 : i32
    %c0_i32_1 = arith.constant 0 : i32
    return %c0_i32, %c0_i32_0 : i32, i32
  }
  func.func @transform_4(%arg0: i32) -> (i32, i32) {
    %c0_i32 = arith.constant 0 : i32
    %c0_i32_0 = arith.constant 0 : i32
    %c0_i32_1 = arith.constant 0 : i32
    return %c0_i32, %c0_i32_0 : i32, i32
  }
  func.func @transform_5(%arg0: i32) -> (i32, i32) {
    %c0_i32 = arith.constant 0 : i32
    %c0_i32_0 = arith.constant 0 : i32
    %c0_i32_1 = arith.constant 0 : i32
    return %c0_i32, %c0_i32_0 : i32, i32
  }
  func.func @transform_6(%arg0: i32) -> (i32, i32) {
    %c0_i32 = arith.constant 0 : i32
    %c0_i32_0 = arith.constant 0 : i32
    %c0_i32_1 = arith.constant 0 : i32
    return %c0_i32, %c0_i32_0 : i32, i32
  }
  func.func @transform_7(%arg0: i32) -> (i32, i32) {
    %c0_i32 = arith.constant 0 : i32
    %c0_i32_0 = arith.constant 0 : i32
    %c0_i32_1 = arith.constant 0 : i32
    return %c0_i32, %c0_i32_0 : i32, i32
  }
  func.func @transform_8(%arg0: i32) -> (i32, i32) {
    %c0_i32 = arith.constant 0 : i32
    %c0_i32_0 = arith.constant 0 : i32
    %c0_i32_1 = arith.constant 0 : i32
    return %c0_i32, %c0_i32_0 : i32, i32
  }
  func.func @transform_9(%arg0: i32) -> (i32, i32) {
    %c0_i32 = arith.constant 0 : i32
    %c0_i32_0 = arith.constant 0 : i32
    %c0_i32_1 = arith.constant 0 : i32
    return %c0_i32, %c0_i32_0 : i32, i32
  }
  func.func @transform_10(%arg0: i32) -> (i32, i32, i32) {
    %c0_i32 = arith.constant 0 : i32
    %c0_i32_0 = arith.constant 0 : i32
    %c0_i32_1 = arith.constant 0 : i32
    return %arg0, %c0_i32, %c0_i32_0 : i32, i32, i32
  }
}

</mosaic_0001>

<bundles_post_ra>
// kernel: tpu_custom_call.1
= control target key start
LH: loop header
LB: loop body
LE: loop exit
PB: predicated region body
PF: predicated region fallthrough
CT: control target
= control target key end

     0   :  { %s2698_s0 = inlined_call_operand.hbm [shape: f32[2,8,32], index: 0, kind: input, shape index: {}]   ;;  %s2699_s1 = inlined_call_operand.hbm [shape: bf16[32,96], index: 1, kind: input, shape index: {}]   ;;  %s2700_s2 = inlined_call_operand.vmem [shape: f32[1,32], index: 2, kind: input, shape index: {}]   ;;  %s2701_s3 = inlined_call_operand.vmem [shape: f32[1,32], index: 3, kind: input, shape index: {}]   ;;  %s2702_s4 = inlined_call_operand.hbm [shape: bf16[32,32], index: 4, kind: input, shape index: {}]   ;;  %s2703_s5 = inlined_call_operand.vmem [shape: f32[1,32], index: 5, kind: input, shape index: {}]   ;;  %s2704_s6 = inlined_call_operand.hbm [shape: bf16[32,32], index: 6, kind: input, shape index: {}]   ;;  %s2705_s7 = inlined_call_operand.vmem [shape: f32[1,32], index: 7, kind: input, shape index: {}]   ;;  %s2706_s8 = inlined_call_operand.vmem [shape: f32[1,32], index: 8, kind: input, shape index: {}]   ;;  %s2707_s9 = inlined_call_operand.vmem [shape: f32[1,32], index: 9, kind: input, shape index: {}]   ;;  %s2708_s10 = inlined_call_operand.hbm [shape: f32[2,8,32], index: 10, kind: output, shape index: {}]  }
   0x1   :  { %2709 = sst [smem:[#allocation16_spill]] %s2699_s1 }
   0x2   :  { %2710 = sst [smem:[#allocation17_spill]] %s2702_s4 }
   0x3   :  { %2711 = sst [smem:[#allocation18_spill]] %s2704_s6 }
   0x4   :  { %15 = vsyncpa [#allocation3], 0 }
   0x5   :  { %17 = vsyncpa [#allocation3 + $0x1], 0 }
   0x6   :  { %18 = vsyncpa [#allocation6], 0 }
   0x7   :  { %19 = vsyncpa [#allocation9], 0 }
   0x8   :  { %20 = vsyncpa [#allocation4], 0 }
   0x9   :  { %22 = vsyncpa [#allocation4 + $0x1], 0  ;;  %s2273_s13 = smov 0   ;;  %s2275_s14 = smov 0  }
   0xa   :  { %s2277_s15 = smov 0   ;;  %s2279_s16 = smov 0  }
   0xb LB: > { %s2712_s1 = sld [smem:[#allocation16_spill]]  ;;  %s2297_s20 = sadd.s32 4294967295, %s2200_s16   ;;  %s2200_s16 = sphi %s2279_s16, %s2727_s16   ;;  %s2196_s15 = sphi %s2277_s15, %s2726_s15   ;;  %s2192_s14 = sphi %s2275_s14, %s2725_s14   ;;  %s2188_s13 = sphi %s2273_s13, %s2724_s13  }
   0xc   : > { %p1785_p0 = scmp.ge.s32.totalorder %s2200_s16, 1  ;;  %p49_p1 = scmp.eq.s32.totalorder %s2297_s20, 0 }
   0xd   : > { %p274_p2 = scmp.lt.s32.totalorder %s2200_s16, 3  ;;  %s2202_s22 = smov [#allocation5]  }
   0xe   : > { %s287_s23 = sshll.u32 %s2202_s22, 4  ;;  %s2714_s4 = sld [smem:[#allocation17_spill]]  ;;  %s288_s23 = int_to_ptr.vmem [resolvable:$true] %s287_s23 }
   0xf   : > { %p2302_p3 = pnand %p1785_p0, %p274_p2  ;;  %s2716_s6 = sld [smem:[#allocation18_spill]] }
  0x10   : > { %s2203_s11 = smov [#allocation7]   ;;  %s2204_s17 = smov 64  }
  0x11   : > { %s285_s19 = sshll.u32 %s2712_s1, 4  ;;  %p1859_p4 = pneg %p2302_p3  ;;  %s286_s19 = int_to_ptr.hbm [resolvable:$true] %s285_s19 }
  0x12   : > { %s307_s12 = sshll.u32 %s2203_s11, 4  ;;  %s2205_s18 = smov 4   ;;  %s308_s12 = int_to_ptr.vmem [resolvable:$true] %s307_s12 }
  0x13   : > { %p2314_p6 = pnand %p1859_p4, %p49_p1  ;;  %s2206_s22 = smov [#allocation8]  }
  0x14   : > { %s305_s26 = sshll.u32 %s2714_s4, 4  ;;  %s324_s24 = sshll.u32 %s2206_s22, 4  ;;  %s306_s26 = int_to_ptr.hbm [resolvable:$true] %s305_s26  ;;  %s325_s24 = int_to_ptr.vmem [resolvable:$true] %s324_s24 }
  0x15   : > { %s322_s30 = sshll.u32 %s2716_s6, 4  ;;  %s1784_s25 = sadd.s32 4294967294, %s2200_s16   ;;  %s323_s30 = int_to_ptr.hbm [resolvable:$true] %s322_s30 }
  0x16   : > { %1862 = dma.hbm_to_vmem [thread:$0]  (!%p2314_p6), %s286_s19, 256, %s288_s23, [#allocation6], %s2204_s17, %s2204_s17, %s2205_s18  }
  0x17   : > { %1865 = dma.hbm_to_vmem [thread:$0]  (!%p2314_p6), %s306_s26, 256, %s308_s12, [#allocation6], %s2204_s17, %s2204_s17, %s2205_s18  }
  0x18   : > { %1868 = dma.hbm_to_vmem [thread:$0]  (!%p2314_p6), %s323_s30, 256, %s325_s24, [#allocation9], %s2204_s17, %s2204_s17, %s2205_s18  }
  0x19   : > { %s2329_s28 = sadd.s32 1, %s2200_s16   ;;  %s35_s29 = sadd.s32 1, %s2196_s15 }
  0x1a   : > { %s32_s19 = ssub.s32 %s2200_s16, %s2329_s28  ;;  %p42_p7 = scmp.ne.s32.totalorder %s2196_s15, %s2192_s14 }
  0x1b   : > { %p33_p8 = scmp.eq.s32.totalorder %s32_s19, 0  ;;  %p43_p9 = scmp.eq.s32.totalorder %s2200_s16, 0 }
  0x1c   : > { %p48_p10 = scmp.ne.s32.totalorder %s2192_s14, %s2188_s13  ;;  %p261_p11 = scmp.eq.s32.totalorder %s2297_s20, 1 }
  0x1d   : > { %s2341_s23 = scalar_select %p33_p8, %s2196_s15, %s35_s29  }
  0x1e   : > { %p2345_p12 = por %p49_p1, %p48_p10  ;;  %p2349_p13 = por %p261_p11, %p42_p7 }
  0x1f   : > { %2717 = sst [smem:[#allocation15_spill]] %s2341_s23  ;;  %p267_p0 = scmp.eq.s32.totalorder %s1784_s25, 1 }
  0x20   : > { %p44_p2 = por %p43_p9, %p42_p7  ;;  %s347_s30 = sand.u32 1, %s2196_s15  }
  0x21   : > { %p2354_p4 = por %p267_p0, %p48_p10  ;;  %p1880_p6 = scmp.lt.s32.totalorder %s2200_s16, 2 }
  0x22   : > { %s1790_s12 = sshll.u32 %s347_s30, 3  ;;  %s1791_s17 = sshll.u32 %s2200_s16, 3 }
  0x23   : > { %s355_s24 = scalar_lea.hbm %s2698_s0, %s1791_s17  ;;  %s351_s19 = scalar_lea.vmem [#allocation2], %s1790_s12 }
  0x24   : > { %s357_s29 = sshll.u32 %s355_s24, 4  ;;  %s359_s1 = sshll.u32 %s351_s19, 4  ;;  %s358_s29 = int_to_ptr.hbm [resolvable:$true] %s357_s29  ;;  %s360_s1 = int_to_ptr.vmem [resolvable:$true] %s359_s1 }
  0x25   : > { %p2363_p8 = pnand %p1880_p6, %p44_p2  ;;  %s348_s4 = scalar_lea.sflag [#allocation3], %s347_s30 }
  0x26   : > { %s2096_s6 = sshra.s32 %s358_s29, 4  ;;  %s2103_s12 = scalar_lea.hbm %s2698_s0, 16  ;;  %s2097_s6 = int_to_ptr.hbm [resolvable:$true] %s2096_s6 }
  0x27   : > { %s2098_s23 = scalar_lea.hbm %s2097_s6, 8  ;;  %p2100_p9 = pneg %p2363_p8 }
  0x28   : > { %p2099_p7 = scmp.ne.s32.totalorder %s2097_s6, %s2098_s23  ;;  %p2104_p0 = scmp.lt.s32.totalorder %s2097_s6, %s2698_s0 }
  0x29   : > { %p2105_p2 = scmp.lt.s32.totalorder %s2103_s12, %s2098_s23 }
  0x2a   : > { %p2101_p10 = pnand %p2100_p9, %p2099_p7 }
  0x2b   : > { %p2106_p6 = por %p2105_p2, %p2104_p0 }
  0x2c   : > { %p2102_p11 = pneg %p2101_p10 }
  0x2e   : > { %p2107_p5 = pnand %p2106_p6, %p2102_p11 }
  0x30   : > { %2110 = shalt.err (!%p2107_p5)
}
  0x31   : > { %1872 = dma.hbm_to_vmem [thread:$0]  (!%p2363_p8), %s358_s29, 128, %s360_s1, %s348_s4  }
  0x32   : > { %368 = sbr.rel (%p2302_p3) target bundleno = 2334 (0x91e), region = 60  ;;  %s2380_s30 = sand.u32 (!%p2302_p3), 1, %s2192_s14  }
  0x33   : > { %s1793_s19 = sshll.u32 (!%p2302_p3), %s2380_s30, 3  ;;  %s371_s17 = scalar_lea.sflag (!%p2302_p3), [#allocation3], %s2380_s30 }
  0x34   : > { %s374_s6 = scalar_lea.vmem (!%p2302_p3), [#allocation2], %s1793_s19 }
  0x37   : > { %2171 = dma.done.wait (%p2345_p12), %s371_s17, 128  }
  0x38   : > { %2173 = vsyncadd (%p2345_p12), %s371_s17, 4294967168 }
  0x39   : > { %2175 = dma.done.wait (%p49_p1), [#allocation6], 512  }
  0x3a   : > { %2177 = vsyncadd (%p49_p1), [#allocation6], 4294966784 }
  0x3b   : > { %2179 = dma.done.wait (%p49_p1), [#allocation9], 256  }
  0x3c   : > { %2181 = vsyncadd (%p49_p1), [#allocation9], 4294967040  ;;  %v1838_v0 = vld [vmem:[#allocation5 + $0x8] sm:$0xff]  ;;  %v1837_v1 = vld [vmem:[#allocation5] sm:$0xff]  ;;  %vm446_vm0 = vcmask 261120   ;;  %s2207_s1 = smov 112  }
  0x3d   : > { %v2398_v2 = vld [vmem:[%s374_s6] sm:$0xff]  ;;  %456 = vmatpush.bf16.msra.mxu0 %v1838_v0  ;;  %s2208_s4 = smov 120   ;;  %s2209_s21 = smov 104   ;;  %v2211_v14 = vmov 1983009808   ;;  %vm474_vm1 = vcmask 1047556  }
  0x3e   : > { %v429_v3 = vpack.c.bf16 %v2398_v2, %v2398_v2  ;;  %s2210_s23 = smov 96   ;;  %v479_v15 = vunpack.c.l.s4 %v2211_v14  ;;  %v2212_v22 = vmov 1934713408   ;;  %vm1143_vm2 = vcmask 1043456   ;;  %s2213_s26 = smov 64  }
  0x3f   : > { %v503_v23 = vunpack.c.l.s4 %v2212_v22  ;;  %vm1139_vm3 = vcmask 64512   ;;  %s2214_s29 = smov 16   ;;  %s2215_s25 = smov 8   ;;  %vm1516_vm4 = vcmask 130048   ;;  %vm1518_vm5 = vcmask 195584  }
  0x40   : > { %v2418_v21 = vunpack.c.0.s8 %v479_v15  ;;  %s2216_s18 = smov 24  }
  0x41   : > { %457 = vmatpush.bf16.msra.mxu0 %v1837_v1  ;;  %v2428_v35 = vunpack.c.0.s8 %v503_v23 }
  0x44   : > { %1806 = vmatmul.msk.bf16.vlgmr.msra.gmra.mxu0 %vm446_vm0, %v429_v3 }
  0xc1   : > { %v2403_v4 = vpop.f32.mrf.mxu0 }
  0xc2   : > { %467 = vrot.lane.b32.xlu1 %v2403_v4, %s2207_s1  ;;  %464 = vrot.lane.b32.xlu0 %v2403_v4, %s2208_s4  ;;  %s1670_s1 = scalar_lea.sflag [#allocation4], %s2380_s30 }
  0xc9   : > { %v461_v5 = vpop.f32.mrf.mxu0 }
  0xca   : > { %470 = vrot.lane.b32.xlu0 %v2403_v4, %s2209_s21 }
 0x134   : > { %v2408_v6 = vpop.permute.xlu0 %464  ;;  %v2412_v8 = vpop.permute.xlu1 %467 }
 0x135   : > { %v1934_v7 = vpack.i.bf16 %v2403_v4, %v2408_v6 }
 0x137   : > { %1935 = vrot.lane.b32.xlu1 %v1934_v7, %s2210_s23 }
 0x13c   : > { %v2414_v9 = vpop.permute.xlu0 %470 }
 0x13d   : > { %v1939_v10 = vpack.i.bf16 %v2412_v8, %v2414_v9 }
 0x13f   : > { %1940 = vrot.lane.b32.xlu2 %v1939_v10, %s2210_s23  ;;  %s1834_s23 = sshll.u32 %s2297_s20, 3  ;;  %s426_s20 = scalar_lea.vmem [#allocation10], %s1793_s19 }
 0x140   : > { %s1680_s12 = scalar_lea.hbm %s2708_s10, %s1834_s23  ;;  %s1682_s17 = sshll.u32 %s426_s20, 4  ;;  %s1683_s17 = int_to_ptr.vmem [resolvable:$true] %s1682_s17 }
 0x141   : > { %s1684_s6 = sshll.u32 %s1680_s12, 4  ;;  %s2146_s19 = scalar_lea.hbm %s2708_s10, 16  ;;  %s1685_s6 = int_to_ptr.hbm [resolvable:$true] %s1684_s6 }
 0x142   : > { %s2140_s4 = sshra.s32 %s1685_s6, 4  ;;  %s2141_s4 = int_to_ptr.hbm [resolvable:$true] %s2140_s4 }
 0x143   : > { %s2142_s21 = scalar_lea.hbm %s2141_s4, 8  ;;  %p2147_p12 = scmp.lt.s32.totalorder %s2141_s4, %s2708_s10 }
 0x144   : > { %p2143_p1 = scmp.ne.s32.totalorder %s2141_s4, %s2142_s21  ;;  %p2148_p8 = scmp.lt.s32.totalorder %s2146_s19, %s2142_s21 }
 0x146   : > { %p2144_p3 = pnand %p2143_p1, %p2349_p13  ;;  %p2149_p7 = por %p2148_p8, %p2147_p12 }
 0x148   : > { %p2145_p5 = pneg %p2144_p3 }
 0x14a   : > { %p2150_p9 = pnand %p2149_p7, %p2145_p5 }
 0x199   : > { %v1941_v11 = vpop.permute.xlu2 %1940 }
 0x19a   : > { %v1943_v12 = vunpack.i.h.bf16 %v1941_v11  ;;  %v1942_v13 = vunpack.i.l.bf16 %v1941_v11 }
 0x19c   : > { %v550_v17 = vrot.slane %v1943_v12, 4  ;;  %v562_v18 = vrot.slane %v1942_v13, 4 }
 0x1a9   : > { %v1936_v16 = vpop.permute.xlu1 %1935 }
 0x1aa   : > { %v1938_v19 = vunpack.i.h.bf16 %v1936_v16  ;;  %v1937_v20 = vunpack.i.l.bf16 %v1936_v16 }
 0x1ac   : > { %v552_v24 = vrot.slane %v1938_v19, 4  ;;  %v551_v25 = vsel %vm474_vm1, %v550_v17, %v1938_v19  ;;  %v563_v26 = vsel %vm474_vm1, %v562_v18, %v1937_v20  ;;  %v564_v27 = vrot.slane %v1937_v20, 4 }
 0x1ad   : > { %v569_v28 = vperm.slane %v563_v26, %v2418_v21  ;;  %v557_v31 = vperm.slane %v551_v25, %v2418_v21 }
 0x1ae   : > { %v553_v29 = vsel %vm474_vm1, %v1943_v12, %v552_v24  ;;  %v565_v30 = vsel %vm474_vm1, %v1942_v13, %v564_v27 }
 0x1af   : > { %v561_v32 = vperm.slane %v553_v29, %v2418_v21  ;;  %v573_v33 = vperm.slane %v565_v30, %v2418_v21  ;;  %v574_v34 = vrot.slane %v569_v28, 4  ;;  %v576_v50 = vrot.slane %v557_v31, 4 }
 0x1b1   : > { %v586_v36 = vrot.slane %v573_v33, 4  ;;  %v588_v37 = vrot.slane %v561_v32, 4  ;;  %v575_v38 = vsel %vm474_vm1, %v574_v34, %v557_v31  ;;  %v577_v57 = vsel %vm474_vm1, %v569_v28, %v576_v50 }
 0x1b2   : > { %v581_v39 = vperm.slane %v575_v38, %v2428_v35  ;;  %v585_v58 = vperm.slane %v577_v57, %v2428_v35 }
 0x1b3   : > { %v589_v40 = vsel %vm474_vm1, %v573_v33, %v588_v37  ;;  %v587_v41 = vsel %vm474_vm1, %v586_v36, %v561_v32 }
 0x1b4   : > { %v598_v42 = vrot.slane %v581_v39, 4  ;;  %v597_v43 = vperm.slane %v589_v40, %v2428_v35  ;;  %v593_v44 = vperm.slane %v587_v41, %v2428_v35  ;;  %v606_v48 = vpack.c.bf16 %v581_v39, %v581_v39 }
 0x1b5   : > { %v600_v59 = vrot.slane %v585_v58, 4  ;;  %v608_v61 = vpack.c.bf16 %v585_v58, %v585_v58 }
 0x1b6   : > { %v599_v45 = vsel %vm474_vm1, 0.0, %v598_v42  ;;  %v604_v46 = vrot.slane %v597_v43, 4  ;;  %v602_v47 = vrot.slane %v593_v44, 4  ;;  %v612_v53 = vpack.c.bf16 %v597_v43, %v597_v43 }
 0x1b7   : > { %v607_v49 = vpack.c.bf16 %v599_v45, %v599_v45  ;;  %v610_v56 = vpack.c.bf16 %v593_v44, %v593_v44  ;;  %v601_v60 = vsel %vm474_vm1, 0.0, %v600_v59 }
 0x1b8   : > { %v605_v51 = vsel %vm474_vm1, 0.0, %v604_v46  ;;  %v603_v52 = vsel %vm474_vm1, 0.0, %v602_v47  ;;  %v609_v62 = vpack.c.bf16 %v601_v60, %v601_v60 }
 0x1b9   : > { %1947 = vxpose.binary.xlu0.c.b16.start.end [1/2] (short) (narrow) %v607_v49, %v606_v48, 16  ;;  %v613_v54 = vpack.c.bf16 %v605_v51, %v605_v51  ;;  %v611_v55 = vpack.c.bf16 %v603_v52, %v603_v52 }
 0x1bb   : > { %1950 = vxpose.binary.xlu1.c.b16.start.end [1/2] (short) (narrow) %v613_v54, %v612_v53, 16 }
 0x1bc   : > { %1944 = vxpose.binary.xlu2.c.b16.start.end [1/2] (short) (narrow) %v611_v55, %v610_v56, 16 }
 0x1cc   : > { %1953 = vxpose.binary.xlu2.c.b16.start.end [1/2] (short) (narrow) %v609_v62, %v608_v61, 16  ;;  %v476_v62 = vrot.slane %v2403_v4, 4 }
 0x25d   : > { %v1945_v63 = vpop.trf.xlu2 }
 0x25e   : > { %v871_v3 = vrot.slane %v1945_v63, 4  ;;  %v473_v63 = vrot.slane %v2412_v8, 4 }
 0x265   : > { %v1946_v0 = vpop.trf.xlu2  ;;  %v1948_v1 = vpop.trf.xlu0 }
 0x266   : > { %v872_v7 = vsel %vm474_vm1, %v871_v3, %v1948_v1  ;;  %v899_v14 = vrot.slane %v1946_v0, 4  ;;  %v477_v0 = vsel %vm474_vm1, %v2412_v8, %v476_v62  ;;  %v488_v1 = vrot.slane %v2408_v6, 4 }
 0x267   : > { %v1951_v5 = vpop.trf.xlu1  ;;  %v876_v11 = vperm.slane %v872_v7, %v2418_v21  ;;  %v486_v3 = vrot.slane %v2414_v9, 4  ;;  %v485_v7 = vperm.slane %v477_v0, %v2418_v21 }
 0x268   : > { %v877_v10 = vrot.slane %v1951_v5, 4  ;;  %v489_v5 = vsel %vm474_vm1, %v2414_v9, %v488_v1 }
 0x269   : > { %v885_v16 = vrot.slane %v876_v11, 4 }
 0x26d   : > { %v1954_v12 = vpop.trf.xlu2  ;;  %v1949_v13 = vpop.trf.xlu0 }
 0x26e   : > { %v878_v15 = vsel %vm474_vm1, %v877_v10, %v1954_v12  ;;  %v900_v19 = vsel %vm474_vm1, %v899_v14, %v1949_v13  ;;  %v475_v10 = vsel %vm474_vm1, %v473_v63, %v2403_v4  ;;  %v487_v12 = vsel %vm474_vm1, %v486_v3, %v2408_v6 }
 0x26f   : > { %v882_v17 = vperm.slane %v878_v15, %v2418_v21  ;;  %v1952_v18 = vpop.trf.xlu1  ;;  %v904_v25 = vperm.slane %v900_v19, %v2418_v21  ;;  %v481_v13 = vperm.slane %v475_v10, %v2418_v21  ;;  %v512_v14 = vrot.slane %v485_v7, 4 }
 0x270   : > { %v905_v23 = vrot.slane %v1952_v18, 4  ;;  %v493_v15 = vperm.slane %v487_v12, %v2418_v21 }
 0x271   : > { %v883_v20 = vrot.slane %v882_v17, 4  ;;  %v886_v22 = vsel %vm474_vm1, %v882_v17, %v885_v16  ;;  %v913_v30 = vrot.slane %v904_v25, 4  ;;  %v500_v18 = vrot.slane %v481_v13, 4 }
 0x272   : > { %v894_v26 = vperm.slane %v886_v22, %v2428_v35 }
 0x273   : > { %v884_v24 = vsel %vm474_vm1, %v883_v20, %v876_v11  ;;  %v497_v11 = vperm.slane %v489_v5, %v2418_v21  ;;  %v498_v20 = vrot.slane %v493_v15, 4  ;;  %v501_v22 = vsel %vm474_vm1, %v493_v15, %v500_v18 }
 0x274   : > { %v890_v29 = vperm.slane %v884_v24, %v2428_v35  ;;  %v897_v32 = vrot.slane %v894_v26, 4  ;;  %v947_v59 = vshrl.u32 %v894_v26, 16  ;;  %v509_v24 = vperm.slane %v501_v22, %v2428_v35 }
 0x275   : > { %v1955_v27 = vpop.trf.xlu2  ;;  %v510_v16 = vrot.slane %v497_v11, 4  ;;  %v513_v17 = vsel %vm474_vm1, %v497_v11, %v512_v14 }
 0x276   : > { %v906_v28 = vsel %vm474_vm1, %v905_v23, %v1955_v27  ;;  %v895_v37 = vrot.slane %v890_v29, 4  ;;  %v898_v40 = vsel %vm474_vm1, 0, %v897_v32  ;;  %v931_v42 = vshrl.u32 %v890_v29, 16 }
 0x277   : > { %v910_v31 = vperm.slane %v906_v28, %v2418_v21  ;;  %v955_v47 = vshrl.u32 %v898_v40, 16  ;;  %v521_v19 = vperm.slane %v513_v17, %v2428_v35  ;;  %v511_v23 = vsel %vm474_vm1, %v510_v16, %v485_v7 }
 0x278   : > { %v896_v45 = vsel %vm474_vm1, 0, %v895_v37  ;;  %v499_v27 = vsel %vm474_vm1, %v498_v20, %v481_v13 }
 0x279   : > { %v911_v33 = vrot.slane %v910_v31, 4  ;;  %v914_v34 = vsel %vm474_vm1, %v910_v31, %v913_v30  ;;  %v939_v54 = vshrl.u32 %v896_v45, 16  ;;  %v524_v30 = vrot.slane %v509_v24, 4 }
 0x27a   : > { %v922_v36 = vperm.slane %v914_v34, %v2428_v35 }
 0x27b   : > { %v912_v38 = vsel %vm474_vm1, %v911_v33, %v904_v25  ;;  %v517_v25 = vperm.slane %v511_v23, %v2428_v35  ;;  %v525_v37 = vsel %vm474_vm1, 0.0, %v524_v30 }
 0x27c   : > { %v918_v39 = vperm.slane %v912_v38, %v2428_v35  ;;  %v925_v41 = vrot.slane %v922_v36, 4  ;;  %v948_v58 = vshrl.u32 %v922_v36, 16  ;;  %v945_v60 = vpack.i.b16 %v922_v36, %v894_v26 }
 0x27d   : > { %v528_v26 = vrot.slane %v521_v19, 4  ;;  %v526_v31 = vrot.slane %v517_v25, 4  ;;  %v536_v38 = vpack.c.bf16 %v521_v19, %v521_v19 }
 0x27e   : > { %v932_v43 = vshrl.u32 %v918_v39, 16  ;;  %v926_v44 = vsel %vm474_vm1, 0, %v925_v41  ;;  %v923_v46 = vrot.slane %v918_v39, 4  ;;  %v929_v49 = vpack.i.b16 %v918_v39, %v890_v29 }
 0x27f   : > { %v956_v48 = vshrl.u32 %v926_v44, 16  ;;  %v953_v52 = vpack.i.b16 %v926_v44, %v898_v40  ;;  %v949_v61 = vpack.i.b16 %v948_v58, %v947_v59  ;;  %v505_v29 = vperm.slane %v499_v27, %v2428_v35 }
 0x280   : > { %v933_v50 = vpack.i.b16 %v932_v43, %v931_v42  ;;  %v924_v51 = vsel %vm474_vm1, 0, %v923_v46  ;;  %v529_v32 = vsel %vm474_vm1, 0.0, %v528_v26  ;;  %v527_v36 = vsel %vm474_vm1, 0.0, %v526_v31 }
 0x281   : > { %v957_v53 = vpack.i.b16 %v956_v48, %v955_v47  ;;  %v940_v55 = vshrl.u32 %v924_v51, 16  ;;  %v937_v56 = vpack.i.b16 %v924_v51, %v896_v45  ;;  %v537_v33 = vpack.c.bf16 %v529_v32, %v529_v32 }
 0x282   : > { %1965 = vxpose.binary.xlu1.c.b16.start.end [1/2] (short) (narrow) %v933_v50, %v929_v49, 16  ;;  %v522_v34 = vrot.slane %v505_v29, 4  ;;  %v535_v42 = vpack.c.bf16 %v527_v36, %v527_v36  ;;  %v533_v44 = vpack.c.bf16 %v525_v37, %v525_v37  ;;  %v532_v46 = vpack.c.bf16 %v509_v24, %v509_v24 }
 0x283   : > { %1959 = vxpose.binary.xlu0.c.b16.start.end [1/2] (short) (narrow) %v957_v53, %v953_v52, 16  ;;  %v941_v57 = vpack.i.b16 %v940_v55, %v939_v54  ;;  %v717_v43 = vrot.slane %v537_v33, 4  ;;  %v534_v47 = vpack.c.bf16 %v517_v25, %v517_v25  ;;  %v697_v48 = vrot.slane %v536_v38, 4 }
 0x284   : > { %v523_v45 = vsel %vm474_vm1, 0.0, %v522_v34  ;;  %v711_v50 = vrot.slane %v535_v42, 4 }
 0x285   : > { %1956 = vxpose.binary.xlu2.c.b16.start.end [1/2] (short) (narrow) %v941_v57, %v937_v56, 16  ;;  %v531_v52 = vpack.c.bf16 %v523_v45, %v523_v45  ;;  %v718_v53 = vsel %vm474_vm1, %v717_v43, %v533_v44  ;;  %v690_v54 = vrot.slane %v534_v47, 4  ;;  %v530_v57 = vpack.c.bf16 %v505_v29, %v505_v29 }
 0x286   : > { %v698_v58 = vsel %vm474_vm1, %v697_v48, %v532_v46 }
 0x287   : > { %v712_v63 = vsel %vm474_vm1, %v711_v50, %v531_v52  ;;  %v702_v1 = vperm.slane %v698_v58, %v2418_v21  ;;  %v692_v7 = vsel %vm474_vm1, %v690_v54, %v530_v57 }
 0x288   : > { %v716_v11 = vperm.slane %v712_v63, %v2418_v21  ;;  %v696_v14 = vperm.slane %v692_v7, %v2418_v21 }
 0x289   : > { %v703_v15 = vrot.slane %v702_v1, 4 }
 0x28b   : > { %v704_v24 = vsel %vm474_vm1, %v703_v15, %v696_v14  ;;  %v1968_v14 = vpack.i.bf16 %v2408_v6, %v2403_v4 }
 0x28c   : > { %v708_v30 = vperm.slane %v704_v24, %v2428_v35 }
 0x293   : > { %1962 = vxpose.binary.xlu0.c.b16.start.end [1/2] (short) (narrow) %v949_v61, %v945_v60, 16  ;;  %v722_v61 = vperm.slane %v718_v53, %v2418_v21 }
 0x295   : > { %v723_v12 = vrot.slane %v722_v61, 4 }
 0x297   : > { %v724_v22 = vsel %vm474_vm1, %v723_v12, %v716_v11 }
 0x298   : > { %v728_v27 = vperm.slane %v724_v22, %v2428_v35 }
 0x29a   : > { %v729_v33 = vrot.slane %v728_v27, 4  ;;  %v735_v43 = vshrl.u32 %v728_v27, 16  ;;  %v733_v48 = vpack.i.b16 %v728_v27, %v708_v30 }
 0x29c   : > { %v730_v50 = vsel %vm474_vm1, 0, %v729_v33 }
 0x29d   : > { %v741_v57 = vshrl.u32 %v730_v50, 16 }
 0x326   : > { %v1957_v39 = vpop.trf.xlu2 }
 0x32e   : > { %v1966_v51 = vpop.trf.xlu1  ;;  %v1958_v62 = vpop.trf.xlu2 }
 0x32f   : > { %v1960_v28 = vpop.trf.xlu0 }
 0x330   : > { %v1093_v41 = vrot.slane %v1960_v28, 4 }
 0x332   : > { %v1094_v49 = vsel %vm474_vm1, %v1093_v41, %v1957_v39  ;;  %v709_v39 = vrot.slane %v708_v30, 4 }
 0x333   : > { %v1098_v55 = vperm.slane %v1094_v49, %v2418_v21  ;;  %v734_v49 = vshrl.u32 %v708_v30, 16 }
 0x334   : > { %v710_v54 = vsel %vm474_vm1, 0, %v709_v39 }
 0x335   : > { %v1099_v3 = vrot.slane %v1098_v55, 4  ;;  %v736_v53 = vpack.i.b16 %v735_v43, %v734_v49  ;;  %v740_v58 = vshrl.u32 %v710_v54, 16 }
 0x336   : > { %v1967_v18 = vpop.trf.xlu1 }
 0x337   : > { %v1961_v40 = vpop.trf.xlu0 }
 0x338   : > { %v1113_v59 = vrot.slane %v1961_v40, 4 }
 0x33a   : > { %v1114_v10 = vsel %vm474_vm1, %v1113_v59, %v1958_v62  ;;  %v742_v59 = vpack.i.b16 %v741_v57, %v740_v58 }
 0x33b   : > { %v1118_v16 = vperm.slane %v1114_v10, %v2418_v21 }
 0x33d   : > { %v1119_v25 = vrot.slane %v1118_v16, 4 }
 0x33f   : > { %v1963_v56 = vpop.trf.xlu0 }
 0x340   : > { %v1087_v60 = vrot.slane %v1963_v56, 4  ;;  %v739_v56 = vpack.i.b16 %v730_v50, %v710_v54 }
 0x342   : > { %v1088_v0 = vsel %vm474_vm1, %v1087_v60, %v1966_v51 }
 0x343   : > { %v1092_v5 = vperm.slane %v1088_v0, %v2418_v21 }
 0x345   : > { %v1100_v13 = vsel %vm474_vm1, %v1099_v3, %v1092_v5 }
 0x346   : > { %v1104_v20 = vperm.slane %v1100_v13, %v2428_v35  ;;  %v1973_v13 = vpack.i.bf16 %v2414_v9, %v2412_v8 }
 0x347   : > { %v1964_v17 = vpop.trf.xlu0 }
 0x348   : > { %v1107_v19 = vrot.slane %v1964_v17, 4  ;;  %v1105_v28 = vrot.slane %v1104_v20, 4  ;;  %v1130_v32 = vshrl.u32 %v1104_v20, 16 }
 0x34a   : > { %v1108_v23 = vsel %vm474_vm1, %v1107_v19, %v1967_v18  ;;  %v1106_v37 = vsel %vm474_vm1, 0, %v1105_v28 }
 0x34b   : > { %v1112_v26 = vperm.slane %v1108_v23, %v2418_v21  ;;  %v1136_v45 = vshrl.u32 %v1106_v37, 16 }
 0x34d   : > { %v1120_v29 = vsel %vm474_vm1, %v1119_v25, %v1112_v26 }
 0x34e   : > { %v1124_v31 = vperm.slane %v1120_v29, %v2428_v35 }
 0x350   : > { %v1129_v34 = vpack.i.b16 %v1124_v31, %v1104_v20  ;;  %v1131_v36 = vshrl.u32 %v1124_v31, 16  ;;  %v1125_v38 = vrot.slane %v1124_v31, 4 }
 0x352   : > { %v1145_v40 = vsel %vm1143_vm2, %v1129_v34, 0  ;;  %v1132_v41 = vpack.i.b16 %v1131_v36, %v1130_v32  ;;  %v1126_v42 = vsel %vm474_vm1, 0, %v1125_v38 }
 0x353   : > { %1154 = vmatpush.bf16.msra.mxu1 %v1145_v40  ;;  %v1135_v44 = vpack.i.b16 %v1126_v42, %v1106_v37  ;;  %v1137_v46 = vshrl.u32 %v1126_v42, 16 }
 0x354   : > { %v1164_v47 = vsel %vm1143_vm2, %v1132_v41, 0 }
 0x355   : > { %1173 = vmatpush.bf16.msra.mxu2 %v1164_v47  ;;  %v1183_v51 = vsel %vm1143_vm2, %v1135_v44, 0  ;;  %v1138_v52 = vpack.i.b16 %v1137_v46, %v1136_v45 }
 0x356   : > { %1807 = vmatmul.msk.bf16.vlgmr.msra.gmra.mxu1 %vm1139_vm3, %v733_v48  ;;  %1192 = vmatpush.bf16.msra.mxu3 %v1183_v51 }
 0x357   : > { %v1202_v55 = vsel %vm1143_vm2, %v1138_v52, 0 }
 0x358   : > { %1808 = vmatmul.msk.bf16.vlgmr.msra.gmra.mxu2 %vm1139_vm3, %v736_v53  ;;  %1211 = vmatpush.bf16.msrb.mxu1 %v1202_v55 }
 0x359   : > { %1809 = vmatmul.msk.bf16.vlgmr.msra.gmra.mxu3 %vm1139_vm3, %v739_v56 }
 0x366   : > { %1810 = vmatmul.msk.bf16.vlgmr.msrb.gmra.mxu1 %vm1139_vm3, %v742_v59 }
 0x3d3   : > { %v1156_v60 = vpop.f32.mrf.mxu1 }
 0x3d4   : > { %v1217_v61 = vsel %vm1139_vm3, %v1156_v60, -inf }
 0x3d5   : > { %1218 = vmax.xlane.f32.xlu2 %v1217_v61 }
 0x3db   : > { %v1158_v62 = vpop.f32.mrf.mxu1  ;;  %v1175_v63 = vpop.f32.mrf.mxu2 }
 0x3dc   : > { %v1194_v0 = vpop.f32.mrf.mxu3  ;;  %v1220_v1 = vsel %vm1139_vm3, %v1175_v63, -inf }
 0x3dd   : > { %1221 = vmax.xlane.f32.xlu0 %v1220_v1  ;;  %v1223_v3 = vsel %vm1139_vm3, %v1194_v0, -inf }
 0x3de   : > { %1224 = vmax.xlane.f32.xlu1 %v1223_v3 }
 0x3e3   : > { %v1177_v5 = vpop.f32.mrf.mxu2  ;;  %v1213_v7 = vpop.f32.mrf.mxu1 }
 0x3e4   : > { %v1196_v10 = vpop.f32.mrf.mxu3  ;;  %v1226_v11 = vsel %vm1139_vm3, %v1213_v7, -inf }
 0x3e6   : > { %1227 = vmax.xlane.f32.xlu1 %v1226_v11 }
 0x3eb   : > { %v1215_v12 = vpop.f32.mrf.mxu1 }
 0x3ed   : > { %1974 = vrot.lane.b32.xlu2 %v1973_v13, %s2213_s26 }
 0x3ff   : > { %1969 = vrot.lane.b32.xlu1 %v1968_v14, %s2213_s26 }
 0x448   : > { %v1219_v15 = vpop.xlane.xlu2 %1218 }
 0x449   : > { %v1229_v16 = vsub.f32 %v1156_v60, %v1219_v15 }
 0x44b   : > { %v1233_v17 = vmul.f32 1.442695, %v1229_v16 }
 0x44d   : > { %1984 = vpow2.f32 %v1233_v17 }
 0x450   : > { %v1222_v18 = vpop.xlane.xlu0 %1221  ;;  %v1975_v32 = vpop.permute.xlu2 %1974 }
 0x451   : > { %v1230_v19 = vsub.f32 %v1175_v63, %v1222_v18  ;;  %v1225_v20 = vpop.xlane.xlu1 %1224  ;;  %v1977_v33 = vunpack.i.h.bf16 %v1975_v32  ;;  %v1976_v34 = vunpack.i.l.bf16 %v1975_v32 }
 0x452   : > { %v1231_v24 = vsub.f32 %v1194_v0, %v1225_v20 }
 0x453   : > { %v2534_v22 = vpop.eup %1984  ;;  %v1235_v23 = vmul.f32 1.442695, %v1230_v19  ;;  %v638_v37 = vrot.slane %v1977_v33, 4  ;;  %v626_v38 = vrot.slane %v1976_v34, 4 }
 0x454   : > { %v1241_v8 = vsel %vm1139_vm3, %v2534_v22, 0.0  ;;  %v1237_v9 = vmul.f32 1.442695, %v1231_v24 }
 0x455   : > { %1986 = vpow2.f32 %v1235_v23  ;;  %1242 = vadd.xlane.f32.xlu0 %v1241_v8 }
 0x456   : > { %1988 = vpow2.f32 %v1237_v9 }
 0x459   : > { %v1228_v25 = vpop.xlane.xlu1 %1227 }
 0x45a   : > { %v1232_v4 = vsub.f32 %v1213_v7, %v1228_v25 }
 0x45b   : > { %v2538_v6 = vpop.eup %1986 }
 0x45c   : > { %v1239_v26 = vmul.f32 1.442695, %v1232_v4  ;;  %v1244_v27 = vsel %vm1139_vm3, %v2538_v6, 0.0  ;;  %v2542_v28 = vpop.eup %1988 }
 0x45d   : > { %1245 = vadd.xlane.f32.xlu0 %v1244_v27  ;;  %v1247_v30 = vsel %vm1139_vm3, %v2542_v28, 0.0 }
 0x45e   : > { %1990 = vpow2.f32 %v1239_v26 }
 0x464   : > { %v2544_v29 = vpop.eup %1990 }
 0x465   : > { %1248 = vadd.xlane.f32.xlu0 %v1247_v30  ;;  %v1250_v31 = vsel %vm1139_vm3, %v2544_v29, 0.0 }
 0x466   : > { %1251 = vadd.xlane.f32.xlu1 %v1250_v31 }
 0x471   : > { %v1970_v36 = vpop.permute.xlu1 %1969 }
 0x472   : > { %v1972_v39 = vunpack.i.h.bf16 %v1970_v36  ;;  %v1971_v40 = vunpack.i.l.bf16 %v1970_v36 }
 0x474   : > { %v639_v41 = vsel %vm474_vm1, %v638_v37, %v1972_v39  ;;  %v640_v42 = vrot.slane %v1972_v39, 4  ;;  %v627_v43 = vsel %vm474_vm1, %v626_v38, %v1971_v40  ;;  %v628_v44 = vrot.slane %v1971_v40, 4 }
 0x475   : > { %v645_v45 = vperm.slane %v639_v41, %v2418_v21  ;;  %v633_v46 = vperm.slane %v627_v43, %v2418_v21 }
 0x476   : > { %v641_v47 = vsel %vm474_vm1, %v1977_v33, %v640_v42  ;;  %v629_v48 = vsel %vm474_vm1, %v1976_v34, %v628_v44 }
 0x477   : > { %v649_v49 = vperm.slane %v641_v47, %v2418_v21  ;;  %v650_v50 = vrot.slane %v645_v45, 4  ;;  %v637_v51 = vperm.slane %v629_v48, %v2418_v21  ;;  %v652_v52 = vrot.slane %v633_v46, 4 }
 0x479   : > { %v662_v53 = vrot.slane %v649_v49, 4  ;;  %v651_v54 = vsel %vm474_vm1, %v650_v50, %v633_v46  ;;  %v653_v55 = vsel %vm474_vm1, %v645_v45, %v652_v52  ;;  %v664_v56 = vrot.slane %v637_v51, 4 }
 0x47a   : > { %v657_v57 = vperm.slane %v651_v54, %v2428_v35  ;;  %v661_v58 = vperm.slane %v653_v55, %v2428_v35 }
 0x47b   : > { %v663_v59 = vsel %vm474_vm1, %v662_v53, %v637_v51  ;;  %v665_v60 = vsel %vm474_vm1, %v649_v49, %v664_v56 }
 0x47c   : > { %v669_v61 = vperm.slane %v663_v59, %v2428_v35  ;;  %v673_v62 = vperm.slane %v665_v60, %v2428_v35  ;;  %v674_v63 = vrot.slane %v657_v57, 4  ;;  %v676_v0 = vrot.slane %v661_v58, 4 }
 0x47d   : > { %v682_v13 = vpack.c.bf16 %v657_v57, %v657_v57  ;;  %v684_v14 = vpack.c.bf16 %v661_v58, %v661_v58 }
 0x47e   : > { %v678_v1 = vrot.slane %v669_v61, 4  ;;  %v680_v3 = vrot.slane %v673_v62, 4  ;;  %v675_v5 = vsel %vm474_vm1, 0.0, %v674_v63  ;;  %v677_v7 = vsel %vm474_vm1, 0.0, %v676_v0 }
 0x47f   : > { %v686_v10 = vpack.c.bf16 %v669_v61, %v669_v61  ;;  %v688_v11 = vpack.c.bf16 %v673_v62, %v673_v62  ;;  %v683_v20 = vpack.c.bf16 %v675_v5, %v675_v5  ;;  %v685_v23 = vpack.c.bf16 %v677_v7, %v677_v7 }
 0x480   : > { %v681_v12 = vsel %vm474_vm1, 0.0, %v680_v3  ;;  %v679_v15 = vsel %vm474_vm1, 0.0, %v678_v1 }
 0x481   : > { %v1265_v16 = vrot.slane %v686_v10, 4  ;;  %v1271_v17 = vrot.slane %v688_v11, 4  ;;  %v687_v18 = vpack.c.bf16 %v679_v15, %v679_v15  ;;  %v689_v19 = vpack.c.bf16 %v681_v12, %v681_v12 }
 0x483   : > { %v1266_v24 = vsel %vm474_vm1, %v1265_v16, %v682_v13  ;;  %v1272_v8 = vsel %vm474_vm1, %v1271_v17, %v684_v14  ;;  %v1285_v9 = vrot.slane %v687_v18, 4  ;;  %v1291_v25 = vrot.slane %v689_v19, 4 }
 0x484   : > { %v1276_v4 = vperm.slane %v1272_v8, %v2418_v21  ;;  %v1270_v30 = vperm.slane %v1266_v24, %v2418_v21 }
 0x485   : > { %v1286_v26 = vsel %vm474_vm1, %v1285_v9, %v683_v20  ;;  %v1292_v27 = vsel %vm474_vm1, %v1291_v25, %v685_v23 }
 0x486   : > { %v1277_v31 = vrot.slane %v1276_v4, 4  ;;  %v1296_v32 = vperm.slane %v1292_v27, %v2418_v21  ;;  %v1290_v34 = vperm.slane %v1286_v26, %v2418_v21 }
 0x488   : > { %v1278_v33 = vsel %vm474_vm1, %v1277_v31, %v1270_v30  ;;  %v1297_v36 = vrot.slane %v1296_v32, 4 }
 0x489   : > { %v1282_v37 = vperm.slane %v1278_v33, %v2428_v35 }
 0x48a   : > { %v1298_v38 = vsel %vm474_vm1, %v1297_v36, %v1290_v34 }
 0x48b   : > { %v1302_v39 = vperm.slane %v1298_v38, %v2428_v35  ;;  %v1283_v40 = vrot.slane %v1282_v37, 4  ;;  %v1308_v41 = vshrl.u32 %v1282_v37, 16 }
 0x48d   : > { %v1307_v42 = vpack.i.b16 %v1302_v39, %v1282_v37  ;;  %v1309_v43 = vshrl.u32 %v1302_v39, 16  ;;  %v1284_v44 = vsel %vm474_vm1, 0, %v1283_v40  ;;  %v1303_v45 = vrot.slane %v1302_v39, 4 }
 0x48e   : > { %v1314_v50 = vshrl.u32 %v1284_v44, 16 }
 0x48f   : > { %v1321_v46 = vsel %vm1143_vm2, %v1307_v42, 0  ;;  %v1310_v47 = vpack.i.b16 %v1309_v43, %v1308_v41  ;;  %v1304_v48 = vsel %vm474_vm1, 0, %v1303_v45 }
 0x490   : > { %1330 = vmatpush.bf16.msrb.mxu2 %v1321_v46  ;;  %v1313_v49 = vpack.i.b16 %v1304_v48, %v1284_v44  ;;  %v1315_v51 = vshrl.u32 %v1304_v48, 16 }
 0x491   : > { %v1340_v52 = vsel %vm1143_vm2, %v1310_v47, 0 }
 0x492   : > { %1349 = vmatpush.bf16.msrb.mxu3 %v1340_v52  ;;  %v1359_v53 = vsel %vm1143_vm2, %v1313_v49, 0  ;;  %v1316_v54 = vpack.i.b16 %v1315_v51, %v1314_v50 }
 0x493   : > { %1368 = vmatpush.bf16.msrb.mxu0 %v1359_v53 }
 0x494   : > { %v1378_v55 = vsel %vm1143_vm2, %v1316_v54, 0 }
 0x495   : > { %1387 = vmatpush.bf16.msra.mxu1 %v1378_v55 }
 0x4c8   : > { %v1243_v56 = vpop.xlane.xlu0 %1242 }
 0x4c9   : > { %1992 = vrcp.f32 %v1243_v56 }
 0x4cf   : > { %v1993_v57 = vpop.eup %1992 }
 0x4d0   : > { %v1257_v58 = vmul.f32 %v1993_v57, %v2534_v22  ;;  %v1246_v59 = vpop.xlane.xlu0 %1245 }
 0x4d1   : > { %1994 = vrcp.f32 %v1246_v59 }
 0x4d2   : > { %v1261_v60 = vpack.c.bf16 %v1257_v58, %v1257_v58 }
 0x4d4   : > { %1811 = vmatmul.msk.bf16.vlgmr.msrb.gmra.mxu2 %vm1139_vm3, %v1261_v60 }
 0x4d7   : > { %v1995_v61 = vpop.eup %1994 }
 0x4d8   : > { %v1258_v62 = vmul.f32 %v1995_v61, %v2538_v6  ;;  %v1249_v63 = vpop.xlane.xlu0 %1248 }
 0x4d9   : > { %1996 = vrcp.f32 %v1249_v63  ;;  %v1252_v0 = vpop.xlane.xlu1 %1251 }
 0x4da   : > { %1998 = vrcp.f32 %v1252_v0  ;;  %v1262_v1 = vpack.c.bf16 %v1258_v62, %v1258_v62 }
 0x4dc   : > { %1812 = vmatmul.msk.bf16.vlgmr.msrb.gmra.mxu3 %vm1139_vm3, %v1262_v1 }
 0x4df   : > { %v1997_v3 = vpop.eup %1996 }
 0x4e0   : > { %v1999_v5 = vpop.eup %1998  ;;  %v1259_v7 = vmul.f32 %v1997_v3, %v2542_v28 }
 0x4e1   : > { %v1260_v22 = vmul.f32 %v1999_v5, %v2544_v29 }
 0x4e2   : > { %v1263_v10 = vpack.c.bf16 %v1259_v7, %v1259_v7 }
 0x4e3   : > { %v1264_v11 = vpack.c.bf16 %v1260_v22, %v1260_v22 }
 0x4e4   : > { %1813 = vmatmul.msk.bf16.vlgmr.msrb.gmra.mxu0 %vm1139_vm3, %v1263_v10 }
 0x4e5   : > { %1814 = vmatmul.msk.bf16.vlgmr.msra.gmra.mxu1 %vm1139_vm3, %v1264_v11 }
 0x557   : > { %v1332_v6 = vpop.f32.mrf.mxu2 }
 0x558   : > { %v1395_v14 = vrot.slane %v1332_v6, 4 }
 0x55f   : > { %v1334_v12 = vpop.f32.mrf.mxu2  ;;  %v1351_v13 = vpop.f32.mrf.mxu3 }
 0x560   : > { %v1407_v15 = vrot.slane %v1351_v13, 4 }
 0x561   : > { %v1370_v16 = vpop.f32.mrf.mxu0 }
 0x562   : > { %v1393_v17 = vrot.slane %v1370_v16, 4  ;;  %v1396_v18 = vsel %vm474_vm1, %v1370_v16, %v1395_v14  ;;  %v1389_v19 = vpop.f32.mrf.mxu1 }
 0x563   : > { %v1404_v28 = vperm.slane %v1396_v18, %v2418_v21  ;;  %v1405_v20 = vrot.slane %v1389_v19, 4  ;;  %v1408_v29 = vsel %vm474_vm1, %v1389_v19, %v1407_v15 }
 0x564   : > { %v1394_v23 = vsel %vm474_vm1, %v1393_v17, %v1332_v6  ;;  %v1416_v24 = vperm.slane %v1408_v29, %v2418_v21 }
 0x565   : > { %v1400_v8 = vperm.slane %v1394_v23, %v2418_v21  ;;  %v1431_v9 = vrot.slane %v1404_v28, 4  ;;  %v1406_v25 = vsel %vm474_vm1, %v1405_v20, %v1351_v13 }
 0x566   : > { %v1412_v4 = vperm.slane %v1406_v25, %v2418_v21  ;;  %v1429_v26 = vrot.slane %v1416_v24, 4 }
 0x567   : > { %v1419_v27 = vrot.slane %v1400_v8, 4  ;;  %v1432_v30 = vsel %vm474_vm1, %v1416_v24, %v1431_v9  ;;  %v1353_v31 = vpop.f32.mrf.mxu3  ;;  %v2217_v9 = vmov 32.0  }
 0x568   : > { %v1417_v32 = vrot.slane %v1412_v4, 4  ;;  %v1430_v33 = vsel %vm474_vm1, %v1429_v26, %v1404_v28  ;;  %v1440_v34 = vperm.slane %v1432_v30, %v2428_v35  ;;  %2000 = vrcp.f32 %v2217_v9 }
 0x569   : > { %v1420_v36 = vsel %vm474_vm1, %v1412_v4, %v1419_v27  ;;  %v1436_v37 = vperm.slane %v1430_v33, %v2428_v35  ;;  %v1372_v38 = vpop.f32.mrf.mxu0 }
 0x56a   : > { %v1418_v39 = vsel %vm474_vm1, %v1417_v32, %v1400_v8  ;;  %v1428_v40 = vperm.slane %v1420_v36, %v2428_v35  ;;  %v1447_v41 = vrot.slane %v1440_v34, 4  ;;  %v1391_v42 = vpop.f32.mrf.mxu1  ;;  %v1839_v38 = vld [vmem:[#allocation7] sm:$0xff] }
 0x56b   : > { %v1424_v43 = vperm.slane %v1418_v39, %v2428_v35  ;;  %v1445_v44 = vrot.slane %v1436_v37, 4  ;;  %v1842_v39 = vld [vmem:[#allocation8 + $0x8] sm:$0xff]  ;;  %v1841_v42 = vld [vmem:[#allocation8] sm:$0xff] }
 0x56c   : > { %v1443_v45 = vrot.slane %v1428_v40, 4  ;;  %v1448_v46 = vsel %vm474_vm1, 0.0, %v1447_v41  ;;  %v1460_v47 = vsel %vm474_vm1, %v1447_v41, %v1436_v37  ;;  %1628 = vmatpush.bf16.msra.mxu3 %v1842_v39 }
 0x56d   : > { %v1441_v48 = vrot.slane %v1424_v43, 4  ;;  %v1446_v49 = vsel %vm474_vm1, 0.0, %v1445_v44  ;;  %v1464_v50 = vperm.slane %v1460_v47, %v2418_v21  ;;  %v1465_v51 = vrot.slane %v1448_v46, 4 }
 0x56e   : > { %v1444_v52 = vsel %vm474_vm1, 0.0, %v1443_v45  ;;  %v1449_v53 = vsel %vm474_vm1, %v1443_v45, %v1424_v43  ;;  %v2001_v25 = vpop.eup %2000 }
 0x56f   : > { %v1454_v54 = vrot.slane %v1444_v52, 4  ;;  %v1442_v55 = vsel %vm474_vm1, 0.0, %v1441_v48  ;;  %v1453_v56 = vperm.slane %v1449_v53, %v2418_v21  ;;  %v1466_v57 = vsel %vm474_vm1, %v1465_v51, %v1446_v49  ;;  %v1979_v52 = vld [vmem:[%s2701_s3] ss:$0 sm:$0xff] }
 0x570   : > { %v1470_v58 = vperm.slane %v1466_v57, %v2418_v21  ;;  %v1485_v59 = vrot.slane %v1464_v50, 4  ;;  %v1527_v4 = vmul.f32 32.0, %v2001_v25  ;;  %vm1531_vm6 = vweird.f32 %v2001_v25  ;;  %1629 = vmatpush.bf16.msra.mxu3 %v1841_v42  ;;  %v1980_v57 = vld [vmem:[%s2703_s5] ss:$0 sm:$0xff] }
 0x571   : > { %v1455_v60 = vsel %vm474_vm1, %v1454_v54, %v1442_v55  ;;  %v1473_v61 = vrot.slane %v1453_v56, 4 }
 0x572   : > { %v1459_v62 = vperm.slane %v1455_v60, %v2418_v21  ;;  %v1486_v63 = vsel %vm474_vm1, %v1470_v58, %v1485_v59  ;;  %v1483_v0 = vrot.slane %v1470_v58, 4  ;;  %v1528_v26 = vsub.f32 1.0, %v1527_v4 }
 0x573   : > { %v1494_v1 = vperm.slane %v1486_v63, %v2428_v35  ;;  %v1981_v63 = vld [vmem:[%s2705_s7] ss:$0 sm:$0xff] }
 0x574   : > { %v1474_v3 = vsel %vm474_vm1, %v1459_v62, %v1473_v61  ;;  %v1471_v5 = vrot.slane %v1459_v62, 4  ;;  %v1484_v7 = vsel %vm474_vm1, %v1483_v0, %v1464_v50  ;;  %v1529_v27 = vmul.f32 %v2001_v25, %v1528_v26  ;;  %v1978_v50 = vld [vmem:[%s2700_s2] ss:$0 sm:$0xff] }
 0x575   : > { %v1482_v22 = vperm.slane %v1474_v3, %v2428_v35  ;;  %v1499_v10 = vrot.slane %v1494_v1, 4  ;;  %v1490_v11 = vperm.slane %v1484_v7, %v2428_v35 }
 0x576   : > { %v1472_v6 = vsel %vm474_vm1, %v1471_v5, %v1453_v56  ;;  %v1530_v30 = vadd.f32 %v2001_v25, %v1529_v27 }
 0x577   : > { %v1500_v12 = vsel %vm474_vm1, %v1499_v10, %v1482_v22  ;;  %v1478_v21 = vperm.slane %v1472_v6, %v2428_v35  ;;  %v1495_v13 = vrot.slane %v1490_v11, 4  ;;  %v1501_v17 = vrot.slane %v1482_v22, 4 }
 0x578   : > { %1508 = vrot.lane.b32.xlu0 %v1500_v12, %s2214_s29  ;;  %v1532_v31 = vsel %vm1531_vm6, %v2001_v25, %v1530_v30 }
 0x579   : > { %v1497_v14 = vrot.slane %v1478_v21, 4  ;;  %v1496_v15 = vsel %vm474_vm1, %v1495_v13, %v1478_v21  ;;  %v1502_v18 = vsel %vm474_vm1, %v1494_v1, %v1501_v17 }
 0x57b   : > { %v1498_v16 = vsel %vm474_vm1, %v1490_v11, %v1497_v14 }
 0x57c   : > { %1504 = vrot.lane.b32.xlu2 %v1498_v16, %s2215_s25 }
 0x584   : > { %1512 = vrot.lane.b32.xlu2 %v1502_v18, %s2216_s18 }
 0x5d6   : > { %v1505_v19 = vpop.permute.xlu2 %1504 }
 0x5d7   : > { %v1515_v35 = vsel %vm1139_vm3, %v1496_v15, %v1505_v19 }
 0x5de   : > { %v1513_v20 = vpop.permute.xlu2 %1512 }
 0x5ea   : > { %v1509_v28 = vpop.permute.xlu0 %1508 }
 0x5eb   : > { %v1517_v29 = vsel %vm1516_vm4, %v1515_v35, %v1509_v28  ;;  %v1982_v28 = vld [vmem:[%s2706_s8] ss:$0 sm:$0xff] }
 0x5ec   : > { %v1519_v23 = vsel %vm1518_vm5, %v1517_v29, %v1513_v20 }
 0x5ed   : > { %v1520_v24 = vadd.f32 %v1519_v23, %v2398_v2  ;;  %v1840_v2 = vld [vmem:[#allocation7 + $0x8] sm:$0xff]  ;;  %v1983_v23 = vld [vmem:[%s2707_s9] ss:$0 sm:$0xff] }
 0x5ee   : > { %1590 = vmatpush.bf16.msra.mxu2 %v1840_v2 }
 0x5ef   : > { %v1523_v8 = vsel %vm446_vm0, %v1520_v24, 0.0 }
 0x5f0   : > { %1524 = vadd.xlane.f32.xlu2 %v1523_v8 }
 0x5f2   : > { %1591 = vmatpush.bf16.msra.mxu2 %v1839_v38 }
 0x663   : > { %v1525_v32 = vpop.xlane.xlu2 %1524 }
 0x664   : > { %v1533_v33 = vmul.f32 %v1532_v31, %v1525_v32 }
 0x666   : > { %v1534_v34 = vsub.f32 %v1520_v24, %v1533_v33 }
 0x668   : > { %v1535_v36 = vmul.f32 %v1534_v34, %v1534_v34 }
 0x66a   : > { %v1536_v37 = vsel %vm446_vm0, %v1535_v36, 0.0 }
 0x66b   : > { %1537 = vadd.xlane.f32.xlu0 %v1536_v37 }
 0x6de   : > { %v1538_v40 = vpop.xlane.xlu0 %1537 }
 0x6df   : > { %v1539_v41 = vmul.f32 %v1538_v40, %v1532_v31 }
 0x6e1   : > { %v1540_v43 = vadd.f32 1e-05, %v1539_v41 }
 0x6e3   : > { %2002 = vrsqrt.f32 %v1540_v43  ;;  %vm1547_vm8 = vweird.f32 %v1540_v43 }
 0x6e9   : > { %v2003_v44 = vpop.eup %2002 }
 0x6ea   : > { %v1542_v45 = vmul.f32 %v2003_v44, %v1540_v43  ;;  %vm1548_vm7 = vweird.f32 %v2003_v44 }
 0x6eb   : > { %vm1549_vm9 = vmor %vm1547_vm8, %vm1548_vm7 }
 0x6ec   : > { %v1543_v46 = vmul.f32 %v2003_v44, %v1542_v45 }
 0x6ee   : > { %v1544_v47 = vmul.f32 0.5, %v1543_v46 }
 0x6f0   : > { %v1545_v48 = vsub.f32 1.5, %v1544_v47 }
 0x6f2   : > { %v1546_v49 = vmul.f32 %v2003_v44, %v1545_v48 }
 0x6f4   : > { %v1550_v51 = vsel %vm1549_vm9, %v2003_v44, %v1546_v49 }
 0x6f5   : > { %v1551_v53 = vmul.f32 %v1550_v51, %v1534_v34 }
 0x6f7   : > { %v1555_v54 = vmul.f32 %v1978_v50, %v1551_v53 }
 0x6f9   : > { %v1559_v55 = vadd.f32 %v1979_v52, %v1555_v54 }
 0x6fb   : > { %v1560_v56 = vpack.c.bf16 %v1559_v55, %v1559_v55 }
 0x6fd   : > { %1823 = vmatmul.msk.bf16.vlgmr.msra.gmra.mxu2 %vm446_vm0, %v1560_v56 }
 0x780   : > { %v1593_v58 = vpop.f32.mrf.mxu2 }
 0x781   : > { %v1594_v59 = vadd.f32 %v1980_v57, %v1593_v58 }
 0x783   : > { %v1597_v60 = vmax.f32 %v1594_v59, 0.0 }
 0x785   : > { %v1598_v61 = vpack.c.bf16 %v1597_v60, %v1597_v60 }
 0x787   : > { %1832 = vmatmul.msk.bf16.vlgmr.msra.gmra.mxu3 %vm446_vm0, %v1598_v61 }
 0x788   : > { %v1595_v62 = vpop.f32.mrf.mxu2 }
 0x80a   : > { %v1631_v0 = vpop.f32.mrf.mxu3 }
 0x80b   : > { %v1632_v1 = vadd.f32 %v1981_v63, %v1631_v0 }
 0x80d   : > { %v1635_v3 = vadd.f32 %v1632_v1, %v1559_v55 }
 0x80f   : > { %v1638_v5 = vsel %vm446_vm0, %v1635_v3, 0.0 }
 0x810   : > { %1639 = vadd.xlane.f32.xlu1 %v1638_v5 }
 0x812   : > { %v1633_v7 = vpop.f32.mrf.mxu3 }
 0x883   : > { %v1640_v22 = vpop.xlane.xlu1 %1639 }
 0x884   : > { %v1641_v10 = vmul.f32 %v1640_v22, %v1532_v31 }
 0x886   : > { %v1642_v11 = vsub.f32 %v1635_v3, %v1641_v10 }
 0x888   : > { %v1643_v6 = vmul.f32 %v1642_v11, %v1642_v11 }
 0x88a   : > { %v1644_v12 = vsel %vm446_vm0, %v1643_v6, 0.0 }
 0x88b   : > { %1645 = vadd.xlane.f32.xlu1 %v1644_v12 }
 0x8fe   : > { %v1646_v21 = vpop.xlane.xlu1 %1645 }
 0x8ff   : > { %v1647_v13 = vmul.f32 %v1646_v21, %v1532_v31 }
 0x901   : > { %v1648_v14 = vadd.f32 1e-05, %v1647_v13 }
 0x903   : > { %2004 = vrsqrt.f32 %v1648_v14  ;;  %vm1655_vm11 = vweird.f32 %v1648_v14 }
 0x909   : > { %v2005_v15 = vpop.eup %2004 }
 0x90a   : > { %v1650_v16 = vmul.f32 %v2005_v15, %v1648_v14  ;;  %vm1656_vm10 = vweird.f32 %v2005_v15 }
 0x90b   : > { %vm1657_vm12 = vmor %vm1655_vm11, %vm1656_vm10 }
 0x90c   : > { %v1651_v17 = vmul.f32 %v2005_v15, %v1650_v16 }
 0x90e   : > { %v1652_v18 = vmul.f32 0.5, %v1651_v17 }
 0x910   : > { %v1653_v19 = vsub.f32 1.5, %v1652_v18 }
 0x912   : > { %v1654_v35 = vmul.f32 %v2005_v15, %v1653_v19 }
 0x914   : > { %v1658_v20 = vsel %vm1657_vm12, %v2005_v15, %v1654_v35 }
 0x915   : > { %v1659_v29 = vmul.f32 %v1658_v20, %v1642_v11 }
 0x917   : > { %v1663_v24 = vmul.f32 %v1982_v28, %v1659_v29 }
 0x919   : > { %v1667_v8 = vadd.f32 %v1983_v23, %v1663_v24 }
 0x91b   : > { %1668 = vst.msk [vmem:[%s426_s20] sm:$0xff] %vm446_vm0, %v1667_v8 }
 0x91c   : > { %2153 = shalt.err (!%p2150_p9)
}
 0x91d   : > { %1857 = dma.vmem_to_hbm [thread:$0]  (%p2349_p13), %s1683_s17, 128, %s1685_s6, %s1670_s1  }
 0x91e PF: > { %s1696_s30 = sand.u32 1, %s2188_s13   ;;  %p2722_p10 = scmp.ge.s32.totalorder %s2200_s16, 2 }
 0x91f   : > { %s1697_s18 = scalar_lea.sflag [#allocation4], %s1696_s30 }
 0x920   : > { %p1874_p11 = pnand %p2722_p10, %p2354_p4 }
 0x922   : > { %p1875_p0 = pneg %p1874_p11 }
 0x924   : > { %2183 = dma.done.wait (%p1875_p0), %s1697_s18, 128  }
 0x925   : > { %2185 = vsyncadd (%p1875_p0), %s1697_s18, 4294967168  ;;  %s2723_s12 = sld [smem:[#allocation15_spill]]  ;;  %p25_p2 = scmp.ge.s32.totalorder %s2329_s28, 4  }
 0x926   : > { %s2724_s13 = smov %s2192_s14  ;;  %s2725_s14 = smov %s2196_s15 }
 0x927   : > { %s2727_s16 = smov %s2329_s28  ;;  %27 = sbr.rel (!%p25_p2) target bundleno = 11 (0xb), region = 117 }
 0x92b   : > { %s2726_s15 = smov %s2723_s12 }
 0x92c   :  { %1703 = vsyncpa [#allocation3], 1 }
 0x92d   :  { %1705 = vsyncpa [#allocation3 + $0x1], 1 }
 0x92e   :  { %1706 = vsyncpa [#allocation6], 1 }
 0x92f   :  { %1707 = vsyncpa [#allocation9], 1 }
 0x930   :  { %1708 = vsyncpa [#allocation4], 1 }
 0x931   :  { %1710 = vsyncpa [#allocation4 + $0x1], 1 }

// kernel: tpu_custom_call.1
= control target key start
LH: loop header
LB: loop body
LE: loop exit
PB: predicated region body
PF: predicated region fallthrough
CT: control target
= control target key end

     0   :  { %s2698_s0 = inlined_call_operand.hbm [shape: f32[2,8,32], index: 0, kind: input, shape index: {}]   ;;  %s2699_s1 = inlined_call_operand.hbm [shape: bf16[32,96], index: 1, kind: input, shape index: {}]   ;;  %s2700_s2 = inlined_call_operand.vmem [shape: f32[1,32], index: 2, kind: input, shape index: {}]   ;;  %s2701_s3 = inlined_call_operand.vmem [shape: f32[1,32], index: 3, kind: input, shape index: {}]   ;;  %s2702_s4 = inlined_call_operand.hbm [shape: bf16[32,32], index: 4, kind: input, shape index: {}]   ;;  %s2703_s5 = inlined_call_operand.vmem [shape: f32[1,32], index: 5, kind: input, shape index: {}]   ;;  %s2704_s6 = inlined_call_operand.hbm [shape: bf16[32,32], index: 6, kind: input, shape index: {}]   ;;  %s2705_s7 = inlined_call_operand.vmem [shape: f32[1,32], index: 7, kind: input, shape index: {}]   ;;  %s2706_s8 = inlined_call_operand.vmem [shape: f32[1,32], index: 8, kind: input, shape index: {}]   ;;  %s2707_s9 = inlined_call_operand.vmem [shape: f32[1,32], index: 9, kind: input, shape index: {}]   ;;  %s2708_s10 = inlined_call_operand.hbm [shape: f32[2,8,32], index: 10, kind: output, shape index: {}]  }
   0x1   :  { %2709 = sst [smem:[#allocation16_spill]] %s2699_s1 }
   0x2   :  { %2710 = sst [smem:[#allocation17_spill]] %s2702_s4 }
   0x3   :  { %2711 = sst [smem:[#allocation18_spill]] %s2704_s6 }
   0x4   :  { %15 = vsyncpa [#allocation3], 0 }
   0x5   :  { %17 = vsyncpa [#allocation3 + $0x1], 0 }
   0x6   :  { %18 = vsyncpa [#allocation6], 0 }
   0x7   :  { %19 = vsyncpa [#allocation9], 0 }
   0x8   :  { %20 = vsyncpa [#allocation4], 0 }
   0x9   :  { %22 = vsyncpa [#allocation4 + $0x1], 0  ;;  %s2273_s13 = smov 0   ;;  %s2275_s14 = smov 0  }
   0xa   :  { %s2277_s15 = smov 0   ;;  %s2279_s16 = smov 0  }
   0xb LB: > { %s2712_s1 = sld [smem:[#allocation16_spill]]  ;;  %s2297_s20 = sadd.s32 4294967295, %s2200_s16   ;;  %s2200_s16 = sphi %s2279_s16, %s2727_s16   ;;  %s2196_s15 = sphi %s2277_s15, %s2726_s15   ;;  %s2192_s14 = sphi %s2275_s14, %s2725_s14   ;;  %s2188_s13 = sphi %s2273_s13, %s2724_s13  }
   0xc   : > { %p1785_p0 = scmp.ge.s32.totalorder %s2200_s16, 1  ;;  %p49_p1 = scmp.eq.s32.totalorder %s2297_s20, 0 }
   0xd   : > { %p274_p2 = scmp.lt.s32.totalorder %s2200_s16, 3  ;;  %s2202_s22 = smov [#allocation5]  }
   0xe   : > { %s287_s23 = sshll.u32 %s2202_s22, 4  ;;  %s2714_s4 = sld [smem:[#allocation17_spill]]  ;;  %s288_s23 = int_to_ptr.vmem [resolvable:$true] %s287_s23 }
   0xf   : > { %p2302_p3 = pnand %p1785_p0, %p274_p2  ;;  %s2716_s6 = sld [smem:[#allocation18_spill]] }
  0x10   : > { %s2203_s11 = smov [#allocation7]   ;;  %s2204_s17 = smov 64  }
  0x11   : > { %s285_s19 = sshll.u32 %s2712_s1, 4  ;;  %p1859_p4 = pneg %p2302_p3  ;;  %s286_s19 = int_to_ptr.hbm [resolvable:$true] %s285_s19 }
  0x12   : > { %s307_s12 = sshll.u32 %s2203_s11, 4  ;;  %s2205_s18 = smov 4   ;;  %s308_s12 = int_to_ptr.vmem [resolvable:$true] %s307_s12 }
  0x13   : > { %p2314_p6 = pnand %p1859_p4, %p49_p1  ;;  %s2206_s22 = smov [#allocation8]  }
  0x14   : > { %s305_s26 = sshll.u32 %s2714_s4, 4  ;;  %s324_s24 = sshll.u32 %s2206_s22, 4  ;;  %s306_s26 = int_to_ptr.hbm [resolvable:$true] %s305_s26  ;;  %s325_s24 = int_to_ptr.vmem [resolvable:$true] %s324_s24 }
  0x15   : > { %s322_s30 = sshll.u32 %s2716_s6, 4  ;;  %s1784_s25 = sadd.s32 4294967294, %s2200_s16   ;;  %s323_s30 = int_to_ptr.hbm [resolvable:$true] %s322_s30 }
  0x16   : > { %1862 = dma.hbm_to_vmem [thread:$0]  (!%p2314_p6), %s286_s19, 256, %s288_s23, [#allocation6], %s2204_s17, %s2204_s17, %s2205_s18  }
  0x17   : > { %1865 = dma.hbm_to_vmem [thread:$0]  (!%p2314_p6), %s306_s26, 256, %s308_s12, [#allocation6], %s2204_s17, %s2204_s17, %s2205_s18  }
  0x18   : > { %1868 = dma.hbm_to_vmem [thread:$0]  (!%p2314_p6), %s323_s30, 256, %s325_s24, [#allocation9], %s2204_s17, %s2204_s17, %s2205_s18  }
  0x19   : > { %s2329_s28 = sadd.s32 1, %s2200_s16   ;;  %s35_s29 = sadd.s32 1, %s2196_s15 }
  0x1a   : > { %s32_s19 = ssub.s32 %s2200_s16, %s2329_s28  ;;  %p42_p7 = scmp.ne.s32.totalorder %s2196_s15, %s2192_s14 }
  0x1b   : > { %p33_p8 = scmp.eq.s32.totalorder %s32_s19, 0  ;;  %p43_p9 = scmp.eq.s32.totalorder %s2200_s16, 0 }
  0x1c   : > { %p48_p10 = scmp.ne.s32.totalorder %s2192_s14, %s2188_s13  ;;  %p261_p11 = scmp.eq.s32.totalorder %s2297_s20, 1 }
  0x1d   : > { %s2341_s23 = scalar_select %p33_p8, %s2196_s15, %s35_s29  }
  0x1e   : > { %p2345_p12 = por %p49_p1, %p48_p10  ;;  %p2349_p13 = por %p261_p11, %p42_p7 }
  0x1f   : > { %2717 = sst [smem:[#allocation15_spill]] %s2341_s23  ;;  %p267_p0 = scmp.eq.s32.totalorder %s1784_s25, 1 }
  0x20   : > { %p44_p2 = por %p43_p9, %p42_p7  ;;  %s347_s30 = sand.u32 1, %s2196_s15  }
  0x21   : > { %p2354_p4 = por %p267_p0, %p48_p10  ;;  %p1880_p6 = scmp.lt.s32.totalorder %s2200_s16, 2 }
  0x22   : > { %s1790_s12 = sshll.u32 %s347_s30, 3  ;;  %s1791_s17 = sshll.u32 %s2200_s16, 3 }
  0x23   : > { %s355_s24 = scalar_lea.hbm %s2698_s0, %s1791_s17  ;;  %s351_s19 = scalar_lea.vmem [#allocation2], %s1790_s12 }
  0x24   : > { %s357_s29 = sshll.u32 %s355_s24, 4  ;;  %s359_s1 = sshll.u32 %s351_s19, 4  ;;  %s358_s29 = int_to_ptr.hbm [resolvable:$true] %s357_s29  ;;  %s360_s1 = int_to_ptr.vmem [resolvable:$true] %s359_s1 }
  0x25   : > { %p2363_p8 = pnand %p1880_p6, %p44_p2  ;;  %s348_s4 = scalar_lea.sflag [#allocation3], %s347_s30 }
  0x26   : > { %s2096_s6 = sshra.s32 %s358_s29, 4  ;;  %s2103_s12 = scalar_lea.hbm %s2698_s0, 16  ;;  %s2097_s6 = int_to_ptr.hbm [resolvable:$true] %s2096_s6 }
  0x27   : > { %s2098_s23 = scalar_lea.hbm %s2097_s6, 8  ;;  %p2100_p9 = pneg %p2363_p8 }
  0x28   : > { %p2099_p7 = scmp.ne.s32.totalorder %s2097_s6, %s2098_s23  ;;  %p2104_p0 = scmp.lt.s32.totalorder %s2097_s6, %s2698_s0 }
  0x29   : > { %p2105_p2 = scmp.lt.s32.totalorder %s2103_s12, %s2098_s23 }
  0x2a   : > { %p2101_p10 = pnand %p2100_p9, %p2099_p7 }
  0x2b   : > { %p2106_p6 = por %p2105_p2, %p2104_p0 }
  0x2c   : > { %p2102_p11 = pneg %p2101_p10 }
  0x2e   : > { %p2107_p5 = pnand %p2106_p6, %p2102_p11 }
  0x30   : > { %2110 = shalt.err (!%p2107_p5)
}
  0x31   : > { %1872 = dma.hbm_to_vmem [thread:$0]  (!%p2363_p8), %s358_s29, 128, %s360_s1, %s348_s4  }
  0x32   : > { %368 = sbr.rel (%p2302_p3) target bundleno = 2334 (0x91e), region = 60  ;;  %s2380_s30 = sand.u32 (!%p2302_p3), 1, %s2192_s14  }
  0x33   : > { %s1793_s19 = sshll.u32 (!%p2302_p3), %s2380_s30, 3  ;;  %s371_s17 = scalar_lea.sflag (!%p2302_p3), [#allocation3], %s2380_s30 }
  0x34   : > { %s374_s6 = scalar_lea.vmem (!%p2302_p3), [#allocation2], %s1793_s19 }
  0x37   : > { %2171 = dma.done.wait (%p2345_p12), %s371_s17, 128  }
  0x38   : > { %2173 = vsyncadd (%p2345_p12), %s371_s17, 4294967168 }
  0x39   : > { %2175 = dma.done.wait (%p49_p1), [#allocation6], 512  }
  0x3a   : > { %2177 = vsyncadd (%p49_p1), [#allocation6], 4294966784 }
  0x3b   : > { %2179 = dma.done.wait (%p49_p1), [#allocation9], 256  }
  0x3c   : > { %2181 = vsyncadd (%p49_p1), [#allocation9], 4294967040  ;;  %v1838_v0 = vld [vmem:[#allocation5 + $0x8] sm:$0xff]  ;;  %v1837_v1 = vld [vmem:[#allocation5] sm:$0xff]  ;;  %vm446_vm0 = vcmask 261120   ;;  %s2207_s1 = smov 112  }
  0x3d   : > { %v2398_v2 = vld [vmem:[%s374_s6] sm:$0xff]  ;;  %456 = vmatpush.bf16.msra.mxu0 %v1838_v0  ;;  %s2208_s4 = smov 120   ;;  %s2209_s21 = smov 104   ;;  %v2211_v14 = vmov 1983009808   ;;  %vm474_vm1 = vcmask 1047556  }
  0x3e   : > { %v429_v3 = vpack.c.bf16 %v2398_v2, %v2398_v2  ;;  %s2210_s23 = smov 96   ;;  %v479_v15 = vunpack.c.l.s4 %v2211_v14  ;;  %v2212_v22 = vmov 1934713408   ;;  %vm1143_vm2 = vcmask 1043456   ;;  %s2213_s26 = smov 64  }
  0x3f   : > { %v503_v23 = vunpack.c.l.s4 %v2212_v22  ;;  %vm1139_vm3 = vcmask 64512   ;;  %s2214_s29 = smov 16   ;;  %s2215_s25 = smov 8   ;;  %vm1516_vm4 = vcmask 130048   ;;  %vm1518_vm5 = vcmask 195584  }
  0x40   : > { %v2418_v21 = vunpack.c.0.s8 %v479_v15  ;;  %s2216_s18 = smov 24  }
  0x41   : > { %457 = vmatpush.bf16.msra.mxu0 %v1837_v1  ;;  %v2428_v35 = vunpack.c.0.s8 %v503_v23 }
  0x44   : > { %1806 = vmatmul.msk.bf16.vlgmr.msra.gmra.mxu0 %vm446_vm0, %v429_v3 }
  0xc1   : > { %v2403_v4 = vpop.f32.mrf.mxu0 }
  0xc2   : > { %467 = vrot.lane.b32.xlu1 %v2403_v4, %s2207_s1  ;;  %464 = vrot.lane.b32.xlu0 %v2403_v4, %s2208_s4  ;;  %s1670_s1 = scalar_lea.sflag [#allocation4], %s2380_s30 }
  0xc9   : > { %v461_v5 = vpop.f32.mrf.mxu0 }
  0xca   : > { %470 = vrot.lane.b32.xlu0 %v2403_v4, %s2209_s21 }
 0x134   : > { %v2408_v6 = vpop.permute.xlu0 %464  ;;  %v2412_v8 = vpop.permute.xlu1 %467 }
 0x135   : > { %v1934_v7 = vpack.i.bf16 %v2403_v4, %v2408_v6 }
 0x137   : > { %1935 = vrot.lane.b32.xlu1 %v1934_v7, %s2210_s23 }
 0x13c   : > { %v2414_v9 = vpop.permute.xlu0 %470 }
 0x13d   : > { %v1939_v10 = vpack.i.bf16 %v2412_v8, %v2414_v9 }
 0x13f   : > { %1940 = vrot.lane.b32.xlu2 %v1939_v10, %s2210_s23  ;;  %s1834_s23 = sshll.u32 %s2297_s20, 3  ;;  %s426_s20 = scalar_lea.vmem [#allocation10], %s1793_s19 }
 0x140   : > { %s1680_s12 = scalar_lea.hbm %s2708_s10, %s1834_s23  ;;  %s1682_s17 = sshll.u32 %s426_s20, 4  ;;  %s1683_s17 = int_to_ptr.vmem [resolvable:$true] %s1682_s17 }
 0x141   : > { %s1684_s6 = sshll.u32 %s1680_s12, 4  ;;  %s2146_s19 = scalar_lea.hbm %s2708_s10, 16  ;;  %s1685_s6 = int_to_ptr.hbm [resolvable:$true] %s1684_s6 }
 0x142   : > { %s2140_s4 = sshra.s32 %s1685_s6, 4  ;;  %s2141_s4 = int_to_ptr.hbm [resolvable:$true] %s2140_s4 }
 0x143   : > { %s2142_s21 = scalar_lea.hbm %s2141_s4, 8  ;;  %p2147_p12 = scmp.lt.s32.totalorder %s2141_s4, %s2708_s10 }
 0x144   : > { %p2143_p1 = scmp.ne.s32.totalorder %s2141_s4, %s2142_s21  ;;  %p2148_p8 = scmp.lt.s32.totalorder %s2146_s19, %s2142_s21 }
 0x146   : > { %p2144_p3 = pnand %p2143_p1, %p2349_p13  ;;  %p2149_p7 = por %p2148_p8, %p2147_p12 }
 0x148   : > { %p2145_p5 = pneg %p2144_p3 }
 0x14a   : > { %p2150_p9 = pnand %p2149_p7, %p2145_p5 }
 0x199   : > { %v1941_v11 = vpop.permute.xlu2 %1940 }
 0x19a   : > { %v1943_v12 = vunpack.i.h.bf16 %v1941_v11  ;;  %v1942_v13 = vunpack.i.l.bf16 %v1941_v11 }
 0x19c   : > { %v550_v17 = vrot.slane %v1943_v12, 4  ;;  %v562_v18 = vrot.slane %v1942_v13, 4 }
 0x1a9   : > { %v1936_v16 = vpop.permute.xlu1 %1935 }
 0x1aa   : > { %v1938_v19 = vunpack.i.h.bf16 %v1936_v16  ;;  %v1937_v20 = vunpack.i.l.bf16 %v1936_v16 }
 0x1ac   : > { %v552_v24 = vrot.slane %v1938_v19, 4  ;;  %v551_v25 = vsel %vm474_vm1, %v550_v17, %v1938_v19  ;;  %v563_v26 = vsel %vm474_vm1, %v562_v18, %v1937_v20  ;;  %v564_v27 = vrot.slane %v1937_v20, 4 }
 0x1ad   : > { %v569_v28 = vperm.slane %v563_v26, %v2418_v21  ;;  %v557_v31 = vperm.slane %v551_v25, %v2418_v21 }
 0x1ae   : > { %v553_v29 = vsel %vm474_vm1, %v1943_v12, %v552_v24  ;;  %v565_v30 = vsel %vm474_vm1, %v1942_v13, %v564_v27 }
 0x1af   : > { %v561_v32 = vperm.slane %v553_v29, %v2418_v21  ;;  %v573_v33 = vperm.slane %v565_v30, %v2418_v21  ;;  %v574_v34 = vrot.slane %v569_v28, 4  ;;  %v576_v50 = vrot.slane %v557_v31, 4 }
 0x1b1   : > { %v586_v36 = vrot.slane %v573_v33, 4  ;;  %v588_v37 = vrot.slane %v561_v32, 4  ;;  %v575_v38 = vsel %vm474_vm1, %v574_v34, %v557_v31  ;;  %v577_v57 = vsel %vm474_vm1, %v569_v28, %v576_v50 }
 0x1b2   : > { %v581_v39 = vperm.slane %v575_v38, %v2428_v35  ;;  %v585_v58 = vperm.slane %v577_v57, %v2428_v35 }
 0x1b3   : > { %v589_v40 = vsel %vm474_vm1, %v573_v33, %v588_v37  ;;  %v587_v41 = vsel %vm474_vm1, %v586_v36, %v561_v32 }
 0x1b4   : > { %v598_v42 = vrot.slane %v581_v39, 4  ;;  %v597_v43 = vperm.slane %v589_v40, %v2428_v35  ;;  %v593_v44 = vperm.slane %v587_v41, %v2428_v35  ;;  %v606_v48 = vpack.c.bf16 %v581_v39, %v581_v39 }
 0x1b5   : > { %v600_v59 = vrot.slane %v585_v58, 4  ;;  %v608_v61 = vpack.c.bf16 %v585_v58, %v585_v58 }
 0x1b6   : > { %v599_v45 = vsel %vm474_vm1, 0.0, %v598_v42  ;;  %v604_v46 = vrot.slane %v597_v43, 4  ;;  %v602_v47 = vrot.slane %v593_v44, 4  ;;  %v612_v53 = vpack.c.bf16 %v597_v43, %v597_v43 }
 0x1b7   : > { %v607_v49 = vpack.c.bf16 %v599_v45, %v599_v45  ;;  %v610_v56 = vpack.c.bf16 %v593_v44, %v593_v44  ;;  %v601_v60 = vsel %vm474_vm1, 0.0, %v600_v59 }
 0x1b8   : > { %v605_v51 = vsel %vm474_vm1, 0.0, %v604_v46  ;;  %v603_v52 = vsel %vm474_vm1, 0.0, %v602_v47  ;;  %v609_v62 = vpack.c.bf16 %v601_v60, %v601_v60 }
 0x1b9   : > { %1947 = vxpose.binary.xlu0.c.b16.start.end [1/2] (short) (narrow) %v607_v49, %v606_v48, 16  ;;  %v613_v54 = vpack.c.bf16 %v605_v51, %v605_v51  ;;  %v611_v55 = vpack.c.bf16 %v603_v52, %v603_v52 }
 0x1bb   : > { %1950 = vxpose.binary.xlu1.c.b16.start.end [1/2] (short) (narrow) %v613_v54, %v612_v53, 16 }
 0x1bc   : > { %1944 = vxpose.binary.xlu2.c.b16.start.end [1/2] (short) (narrow) %v611_v55, %v610_v56, 16 }
 0x1cc   : > { %1953 = vxpose.binary.xlu2.c.b16.start.end [1/2] (short) (narrow) %v609_v62, %v608_v61, 16  ;;  %v476_v62 = vrot.slane %v2403_v4, 4 }
 0x25d   : > { %v1945_v63 = vpop.trf.xlu2 }
 0x25e   : > { %v871_v3 = vrot.slane %v1945_v63, 4  ;;  %v473_v63 = vrot.slane %v2412_v8, 4 }
 0x265   : > { %v1946_v0 = vpop.trf.xlu2  ;;  %v1948_v1 = vpop.trf.xlu0 }
 0x266   : > { %v872_v7 = vsel %vm474_vm1, %v871_v3, %v1948_v1  ;;  %v899_v14 = vrot.slane %v1946_v0, 4  ;;  %v477_v0 = vsel %vm474_vm1, %v2412_v8, %v476_v62  ;;  %v488_v1 = vrot.slane %v2408_v6, 4 }
 0x267   : > { %v1951_v5 = vpop.trf.xlu1  ;;  %v876_v11 = vperm.slane %v872_v7, %v2418_v21  ;;  %v486_v3 = vrot.slane %v2414_v9, 4  ;;  %v485_v7 = vperm.slane %v477_v0, %v2418_v21 }
 0x268   : > { %v877_v10 = vrot.slane %v1951_v5, 4  ;;  %v489_v5 = vsel %vm474_vm1, %v2414_v9, %v488_v1 }
 0x269   : > { %v885_v16 = vrot.slane %v876_v11, 4 }
 0x26d   : > { %v1954_v12 = vpop.trf.xlu2  ;;  %v1949_v13 = vpop.trf.xlu0 }
 0x26e   : > { %v878_v15 = vsel %vm474_vm1, %v877_v10, %v1954_v12  ;;  %v900_v19 = vsel %vm474_vm1, %v899_v14, %v1949_v13  ;;  %v475_v10 = vsel %vm474_vm1, %v473_v63, %v2403_v4  ;;  %v487_v12 = vsel %vm474_vm1, %v486_v3, %v2408_v6 }
 0x26f   : > { %v882_v17 = vperm.slane %v878_v15, %v2418_v21  ;;  %v1952_v18 = vpop.trf.xlu1  ;;  %v904_v25 = vperm.slane %v900_v19, %v2418_v21  ;;  %v481_v13 = vperm.slane %v475_v10, %v2418_v21  ;;  %v512_v14 = vrot.slane %v485_v7, 4 }
 0x270   : > { %v905_v23 = vrot.slane %v1952_v18, 4  ;;  %v493_v15 = vperm.slane %v487_v12, %v2418_v21 }
 0x271   : > { %v883_v20 = vrot.slane %v882_v17, 4  ;;  %v886_v22 = vsel %vm474_vm1, %v882_v17, %v885_v16  ;;  %v913_v30 = vrot.slane %v904_v25, 4  ;;  %v500_v18 = vrot.slane %v481_v13, 4 }
 0x272   : > { %v894_v26 = vperm.slane %v886_v22, %v2428_v35 }
 0x273   : > { %v884_v24 = vsel %vm474_vm1, %v883_v20, %v876_v11  ;;  %v497_v11 = vperm.slane %v489_v5, %v2418_v21  ;;  %v498_v20 = vrot.slane %v493_v15, 4  ;;  %v501_v22 = vsel %vm474_vm1, %v493_v15, %v500_v18 }
 0x274   : > { %v890_v29 = vperm.slane %v884_v24, %v2428_v35  ;;  %v897_v32 = vrot.slane %v894_v26, 4  ;;  %v947_v59 = vshrl.u32 %v894_v26, 16  ;;  %v509_v24 = vperm.slane %v501_v22, %v2428_v35 }
 0x275   : > { %v1955_v27 = vpop.trf.xlu2  ;;  %v510_v16 = vrot.slane %v497_v11, 4  ;;  %v513_v17 = vsel %vm474_vm1, %v497_v11, %v512_v14 }
 0x276   : > { %v906_v28 = vsel %vm474_vm1, %v905_v23, %v1955_v27  ;;  %v895_v37 = vrot.slane %v890_v29, 4  ;;  %v898_v40 = vsel %vm474_vm1, 0, %v897_v32  ;;  %v931_v42 = vshrl.u32 %v890_v29, 16 }
 0x277   : > { %v910_v31 = vperm.slane %v906_v28, %v2418_v21  ;;  %v955_v47 = vshrl.u32 %v898_v40, 16  ;;  %v521_v19 = vperm.slane %v513_v17, %v2428_v35  ;;  %v511_v23 = vsel %vm474_vm1, %v510_v16, %v485_v7 }
 0x278   : > { %v896_v45 = vsel %vm474_vm1, 0, %v895_v37  ;;  %v499_v27 = vsel %vm474_vm1, %v498_v20, %v481_v13 }
 0x279   : > { %v911_v33 = vrot.slane %v910_v31, 4  ;;  %v914_v34 = vsel %vm474_vm1, %v910_v31, %v913_v30  ;;  %v939_v54 = vshrl.u32 %v896_v45, 16  ;;  %v524_v30 = vrot.slane %v509_v24, 4 }
 0x27a   : > { %v922_v36 = vperm.slane %v914_v34, %v2428_v35 }
 0x27b   : > { %v912_v38 = vsel %vm474_vm1, %v911_v33, %v904_v25  ;;  %v517_v25 = vperm.slane %v511_v23, %v2428_v35  ;;  %v525_v37 = vsel %vm474_vm1, 0.0, %v524_v30 }
 0x27c   : > { %v918_v39 = vperm.slane %v912_v38, %v2428_v35  ;;  %v925_v41 = vrot.slane %v922_v36, 4  ;;  %v948_v58 = vshrl.u32 %v922_v36, 16  ;;  %v945_v60 = vpack.i.b16 %v922_v36, %v894_v26 }
 0x27d   : > { %v528_v26 = vrot.slane %v521_v19, 4  ;;  %v526_v31 = vrot.slane %v517_v25, 4  ;;  %v536_v38 = vpack.c.bf16 %v521_v19, %v521_v19 }
 0x27e   : > { %v932_v43 = vshrl.u32 %v918_v39, 16  ;;  %v926_v44 = vsel %vm474_vm1, 0, %v925_v41  ;;  %v923_v46 = vrot.slane %v918_v39, 4  ;;  %v929_v49 = vpack.i.b16 %v918_v39, %v890_v29 }
 0x27f   : > { %v956_v48 = vshrl.u32 %v926_v44, 16  ;;  %v953_v52 = vpack.i.b16 %v926_v44, %v898_v40  ;;  %v949_v61 = vpack.i.b16 %v948_v58, %v947_v59  ;;  %v505_v29 = vperm.slane %v499_v27, %v2428_v35 }
 0x280   : > { %v933_v50 = vpack.i.b16 %v932_v43, %v931_v42  ;;  %v924_v51 = vsel %vm474_vm1, 0, %v923_v46  ;;  %v529_v32 = vsel %vm474_vm1, 0.0, %v528_v26  ;;  %v527_v36 = vsel %vm474_vm1, 0.0, %v526_v31 }
 0x281   : > { %v957_v53 = vpack.i.b16 %v956_v48, %v955_v47  ;;  %v940_v55 = vshrl.u32 %v924_v51, 16  ;;  %v937_v56 = vpack.i.b16 %v924_v51, %v896_v45  ;;  %v537_v33 = vpack.c.bf16 %v529_v32, %v529_v32 }
 0x282   : > { %1965 = vxpose.binary.xlu1.c.b16.start.end [1/2] (short) (narrow) %v933_v50, %v929_v49, 16  ;;  %v522_v34 = vrot.slane %v505_v29, 4  ;;  %v535_v42 = vpack.c.bf16 %v527_v36, %v527_v36  ;;  %v533_v44 = vpack.c.bf16 %v525_v37, %v525_v37  ;;  %v532_v46 = vpack.c.bf16 %v509_v24, %v509_v24 }
 0x283   : > { %1959 = vxpose.binary.xlu0.c.b16.start.end [1/2] (short) (narrow) %v957_v53, %v953_v52, 16  ;;  %v941_v57 = vpack.i.b16 %v940_v55, %v939_v54  ;;  %v717_v43 = vrot.slane %v537_v33, 4  ;;  %v534_v47 = vpack.c.bf16 %v517_v25, %v517_v25  ;;  %v697_v48 = vrot.slane %v536_v38, 4 }
 0x284   : > { %v523_v45 = vsel %vm474_vm1, 0.0, %v522_v34  ;;  %v711_v50 = vrot.slane %v535_v42, 4 }
 0x285   : > { %1956 = vxpose.binary.xlu2.c.b16.start.end [1/2] (short) (narrow) %v941_v57, %v937_v56, 16  ;;  %v531_v52 = vpack.c.bf16 %v523_v45, %v523_v45  ;;  %v718_v53 = vsel %vm474_vm1, %v717_v43, %v533_v44  ;;  %v690_v54 = vrot.slane %v534_v47, 4  ;;  %v530_v57 = vpack.c.bf16 %v505_v29, %v505_v29 }
 0x286   : > { %v698_v58 = vsel %vm474_vm1, %v697_v48, %v532_v46 }
 0x287   : > { %v712_v63 = vsel %vm474_vm1, %v711_v50, %v531_v52  ;;  %v702_v1 = vperm.slane %v698_v58, %v2418_v21  ;;  %v692_v7 = vsel %vm474_vm1, %v690_v54, %v530_v57 }
 0x288   : > { %v716_v11 = vperm.slane %v712_v63, %v2418_v21  ;;  %v696_v14 = vperm.slane %v692_v7, %v2418_v21 }
 0x289   : > { %v703_v15 = vrot.slane %v702_v1, 4 }
 0x28b   : > { %v704_v24 = vsel %vm474_vm1, %v703_v15, %v696_v14  ;;  %v1968_v14 = vpack.i.bf16 %v2408_v6, %v2403_v4 }
 0x28c   : > { %v708_v30 = vperm.slane %v704_v24, %v2428_v35 }
 0x293   : > { %1962 = vxpose.binary.xlu0.c.b16.start.end [1/2] (short) (narrow) %v949_v61, %v945_v60, 16  ;;  %v722_v61 = vperm.slane %v718_v53, %v2418_v21 }
 0x295   : > { %v723_v12 = vrot.slane %v722_v61, 4 }
 0x297   : > { %v724_v22 = vsel %vm474_vm1, %v723_v12, %v716_v11 }
 0x298   : > { %v728_v27 = vperm.slane %v724_v22, %v2428_v35 }
 0x29a   : > { %v729_v33 = vrot.slane %v728_v27, 4  ;;  %v735_v43 = vshrl.u32 %v728_v27, 16  ;;  %v733_v48 = vpack.i.b16 %v728_v27, %v708_v30 }
 0x29c   : > { %v730_v50 = vsel %vm474_vm1, 0, %v729_v33 }
 0x29d   : > { %v741_v57 = vshrl.u32 %v730_v50, 16 }
 0x326   : > { %v1957_v39 = vpop.trf.xlu2 }
 0x32e   : > { %v1966_v51 = vpop.trf.xlu1  ;;  %v1958_v62 = vpop.trf.xlu2 }
 0x32f   : > { %v1960_v28 = vpop.trf.xlu0 }
 0x330   : > { %v1093_v41 = vrot.slane %v1960_v28, 4 }
 0x332   : > { %v1094_v49 = vsel %vm474_vm1, %v1093_v41, %v1957_v39  ;;  %v709_v39 = vrot.slane %v708_v30, 4 }
 0x333   : > { %v1098_v55 = vperm.slane %v1094_v49, %v2418_v21  ;;  %v734_v49 = vshrl.u32 %v708_v30, 16 }
 0x334   : > { %v710_v54 = vsel %vm474_vm1, 0, %v709_v39 }
 0x335   : > { %v1099_v3 = vrot.slane %v1098_v55, 4  ;;  %v736_v53 = vpack.i.b16 %v735_v43, %v734_v49  ;;  %v740_v58 = vshrl.u32 %v710_v54, 16 }
 0x336   : > { %v1967_v18 = vpop.trf.xlu1 }
 0x337   : > { %v1961_v40 = vpop.trf.xlu0 }
 0x338   : > { %v1113_v59 = vrot.slane %v1961_v40, 4 }
 0x33a   : > { %v1114_v10 = vsel %vm474_vm1, %v1113_v59, %v1958_v62  ;;  %v742_v59 = vpack.i.b16 %v741_v57, %v740_v58 }
 0x33b   : > { %v1118_v16 = vperm.slane %v1114_v10, %v2418_v21 }
 0x33d   : > { %v1119_v25 = vrot.slane %v1118_v16, 4 }
 0x33f   : > { %v1963_v56 = vpop.trf.xlu0 }
 0x340   : > { %v1087_v60 = vrot.slane %v1963_v56, 4  ;;  %v739_v56 = vpack.i.b16 %v730_v50, %v710_v54 }
 0x342   : > { %v1088_v0 = vsel %vm474_vm1, %v1087_v60, %v1966_v51 }
 0x343   : > { %v1092_v5 = vperm.slane %v1088_v0, %v2418_v21 }
 0x345   : > { %v1100_v13 = vsel %vm474_vm1, %v1099_v3, %v1092_v5 }
 0x346   : > { %v1104_v20 = vperm.slane %v1100_v13, %v2428_v35  ;;  %v1973_v13 = vpack.i.bf16 %v2414_v9, %v2412_v8 }
 0x347   : > { %v1964_v17 = vpop.trf.xlu0 }
 0x348   : > { %v1107_v19 = vrot.slane %v1964_v17, 4  ;;  %v1105_v28 = vrot.slane %v1104_v20, 4  ;;  %v1130_v32 = vshrl.u32 %v1104_v20, 16 }
 0x34a   : > { %v1108_v23 = vsel %vm474_vm1, %v1107_v19, %v1967_v18  ;;  %v1106_v37 = vsel %vm474_vm1, 0, %v1105_v28 }
 0x34b   : > { %v1112_v26 = vperm.slane %v1108_v23, %v2418_v21  ;;  %v1136_v45 = vshrl.u32 %v1106_v37, 16 }
 0x34d   : > { %v1120_v29 = vsel %vm474_vm1, %v1119_v25, %v1112_v26 }
 0x34e   : > { %v1124_v31 = vperm.slane %v1120_v29, %v2428_v35 }
 0x350   : > { %v1129_v34 = vpack.i.b16 %v1124_v31, %v1104_v20  ;;  %v1131_v36 = vshrl.u32 %v1124_v31, 16  ;;  %v1125_v38 = vrot.slane %v1124_v31, 4 }
 0x352   : > { %v1145_v40 = vsel %vm1143_vm2, %v1129_v34, 0  ;;  %v1132_v41 = vpack.i.b16 %v1131_v36, %v1130_v32  ;;  %v1126_v42 = vsel %vm474_vm1, 0, %v1125_v38 }
 0x353   : > { %1154 = vmatpush.bf16.msra.mxu1 %v1145_v40  ;;  %v1135_v44 = vpack.i.b16 %v1126_v42, %v1106_v37  ;;  %v1137_v46 = vshrl.u32 %v1126_v42, 16 }
 0x354   : > { %v1164_v47 = vsel %vm1143_vm2, %v1132_v41, 0 }
 0x355   : > { %1173 = vmatpush.bf16.msra.mxu2 %v1164_v47  ;;  %v1183_v51 = vsel %vm1143_vm2, %v1135_v44, 0  ;;  %v1138_v52 = vpack.i.b16 %v1137_v46, %v1136_v45 }
 0x356   : > { %1807 = vmatmul.msk.bf16.vlgmr.msra.gmra.mxu1 %vm1139_vm3, %v733_v48  ;;  %1192 = vmatpush.bf16.msra.mxu3 %v1183_v51 }
 0x357   : > { %v1202_v55 = vsel %vm1143_vm2, %v1138_v52, 0 }
 0x358   : > { %1808 = vmatmul.msk.bf16.vlgmr.msra.gmra.mxu2 %vm1139_vm3, %v736_v53  ;;  %1211 = vmatpush.bf16.msrb.mxu1 %v1202_v55 }
 0x359   : > { %1809 = vmatmul.msk.bf16.vlgmr.msra.gmra.mxu3 %vm1139_vm3, %v739_v56 }
 0x366   : > { %1810 = vmatmul.msk.bf16.vlgmr.msrb.gmra.mxu1 %vm1139_vm3, %v742_v59 }
 0x3d3   : > { %v1156_v60 = vpop.f32.mrf.mxu1 }
 0x3d4   : > { %v1217_v61 = vsel %vm1139_vm3, %v1156_v60, -inf }
 0x3d5   : > { %1218 = vmax.xlane.f32.xlu2 %v1217_v61 }
 0x3db   : > { %v1158_v62 = vpop.f32.mrf.mxu1  ;;  %v1175_v63 = vpop.f32.mrf.mxu2 }
 0x3dc   : > { %v1194_v0 = vpop.f32.mrf.mxu3  ;;  %v1220_v1 = vsel %vm1139_vm3, %v1175_v63, -inf }
 0x3dd   : > { %1221 = vmax.xlane.f32.xlu0 %v1220_v1  ;;  %v1223_v3 = vsel %vm1139_vm3, %v1194_v0, -inf }
 0x3de   : > { %1224 = vmax.xlane.f32.xlu1 %v1223_v3 }
 0x3e3   : > { %v1177_v5 = vpop.f32.mrf.mxu2  ;;  %v1213_v7 = vpop.f32.mrf.mxu1 }
 0x3e4   : > { %v1196_v10 = vpop.f32.mrf.mxu3  ;;  %v1226_v11 = vsel %vm1139_vm3, %v1213_v7, -inf }
 0x3e6   : > { %1227 = vmax.xlane.f32.xlu1 %v1226_v11 }
 0x3eb   : > { %v1215_v12 = vpop.f32.mrf.mxu1 }
 0x3ed   : > { %1974 = vrot.lane.b32.xlu2 %v1973_v13, %s2213_s26 }
 0x3ff   : > { %1969 = vrot.lane.b32.xlu1 %v1968_v14, %s2213_s26 }
 0x448   : > { %v1219_v15 = vpop.xlane.xlu2 %1218 }
 0x449   : > { %v1229_v16 = vsub.f32 %v1156_v60, %v1219_v15 }
 0x44b   : > { %v1233_v17 = vmul.f32 1.442695, %v1229_v16 }
 0x44d   : > { %1984 = vpow2.f32 %v1233_v17 }
 0x450   : > { %v1222_v18 = vpop.xlane.xlu0 %1221  ;;  %v1975_v32 = vpop.permute.xlu2 %1974 }
 0x451   : > { %v1230_v19 = vsub.f32 %v1175_v63, %v1222_v18  ;;  %v1225_v20 = vpop.xlane.xlu1 %1224  ;;  %v1977_v33 = vunpack.i.h.bf16 %v1975_v32  ;;  %v1976_v34 = vunpack.i.l.bf16 %v1975_v32 }
 0x452   : > { %v1231_v24 = vsub.f32 %v1194_v0, %v1225_v20 }
 0x453   : > { %v2534_v22 = vpop.eup %1984  ;;  %v1235_v23 = vmul.f32 1.442695, %v1230_v19  ;;  %v638_v37 = vrot.slane %v1977_v33, 4  ;;  %v626_v38 = vrot.slane %v1976_v34, 4 }
 0x454   : > { %v1241_v8 = vsel %vm1139_vm3, %v2534_v22, 0.0  ;;  %v1237_v9 = vmul.f32 1.442695, %v1231_v24 }
 0x455   : > { %1986 = vpow2.f32 %v1235_v23  ;;  %1242 = vadd.xlane.f32.xlu0 %v1241_v8 }
 0x456   : > { %1988 = vpow2.f32 %v1237_v9 }
 0x459   : > { %v1228_v25 = vpop.xlane.xlu1 %1227 }
 0x45a   : > { %v1232_v4 = vsub.f32 %v1213_v7, %v1228_v25 }
 0x45b   : > { %v2538_v6 = vpop.eup %1986 }
 0x45c   : > { %v1239_v26 = vmul.f32 1.442695, %v1232_v4  ;;  %v1244_v27 = vsel %vm1139_vm3, %v2538_v6, 0.0  ;;  %v2542_v28 = vpop.eup %1988 }
 0x45d   : > { %1245 = vadd.xlane.f32.xlu0 %v1244_v27  ;;  %v1247_v30 = vsel %vm1139_vm3, %v2542_v28, 0.0 }
 0x45e   : > { %1990 = vpow2.f32 %v1239_v26 }
 0x464   : > { %v2544_v29 = vpop.eup %1990 }
 0x465   : > { %1248 = vadd.xlane.f32.xlu0 %v1247_v30  ;;  %v1250_v31 = vsel %vm1139_vm3, %v2544_v29, 0.0 }
 0x466   : > { %1251 = vadd.xlane.f32.xlu1 %v1250_v31 }
 0x471   : > { %v1970_v36 = vpop.permute.xlu1 %1969 }
 0x472   : > { %v1972_v39 = vunpack.i.h.bf16 %v1970_v36  ;;  %v1971_v40 = vunpack.i.l.bf16 %v1970_v36 }
 0x474   : > { %v639_v41 = vsel %vm474_vm1, %v638_v37, %v1972_v39  ;;  %v640_v42 = vrot.slane %v1972_v39, 4  ;;  %v627_v43 = vsel %vm474_vm1, %v626_v38, %v1971_v40  ;;  %v628_v44 = vrot.slane %v1971_v40, 4 }
 0x475   : > { %v645_v45 = vperm.slane %v639_v41, %v2418_v21  ;;  %v633_v46 = vperm.slane %v627_v43, %v2418_v21 }
 0x476   : > { %v641_v47 = vsel %vm474_vm1, %v1977_v33, %v640_v42  ;;  %v629_v48 = vsel %vm474_vm1, %v1976_v34, %v628_v44 }
 0x477   : > { %v649_v49 = vperm.slane %v641_v47, %v2418_v21  ;;  %v650_v50 = vrot.slane %v645_v45, 4  ;;  %v637_v51 = vperm.slane %v629_v48, %v2418_v21  ;;  %v652_v52 = vrot.slane %v633_v46, 4 }
 0x479   : > { %v662_v53 = vrot.slane %v649_v49, 4  ;;  %v651_v54 = vsel %vm474_vm1, %v650_v50, %v633_v46  ;;  %v653_v55 = vsel %vm474_vm1, %v645_v45, %v652_v52  ;;  %v664_v56 = vrot.slane %v637_v51, 4 }
 0x47a   : > { %v657_v57 = vperm.slane %v651_v54, %v2428_v35  ;;  %v661_v58 = vperm.slane %v653_v55, %v2428_v35 }
 0x47b   : > { %v663_v59 = vsel %vm474_vm1, %v662_v53, %v637_v51  ;;  %v665_v60 = vsel %vm474_vm1, %v649_v49, %v664_v56 }
 0x47c   : > { %v669_v61 = vperm.slane %v663_v59, %v2428_v35  ;;  %v673_v62 = vperm.slane %v665_v60, %v2428_v35  ;;  %v674_v63 = vrot.slane %v657_v57, 4  ;;  %v676_v0 = vrot.slane %v661_v58, 4 }
 0x47d   : > { %v682_v13 = vpack.c.bf16 %v657_v57, %v657_v57  ;;  %v684_v14 = vpack.c.bf16 %v661_v58, %v661_v58 }
 0x47e   : > { %v678_v1 = vrot.slane %v669_v61, 4  ;;  %v680_v3 = vrot.slane %v673_v62, 4  ;;  %v675_v5 = vsel %vm474_vm1, 0.0, %v674_v63  ;;  %v677_v7 = vsel %vm474_vm1, 0.0, %v676_v0 }
 0x47f   : > { %v686_v10 = vpack.c.bf16 %v669_v61, %v669_v61  ;;  %v688_v11 = vpack.c.bf16 %v673_v62, %v673_v62  ;;  %v683_v20 = vpack.c.bf16 %v675_v5, %v675_v5  ;;  %v685_v23 = vpack.c.bf16 %v677_v7, %v677_v7 }
 0x480   : > { %v681_v12 = vsel %vm474_vm1, 0.0, %v680_v3  ;;  %v679_v15 = vsel %vm474_vm1, 0.0, %v678_v1 }
 0x481   : > { %v1265_v16 = vrot.slane %v686_v10, 4  ;;  %v1271_v17 = vrot.slane %v688_v11, 4  ;;  %v687_v18 = vpack.c.bf16 %v679_v15, %v679_v15  ;;  %v689_v19 = vpack.c.bf16 %v681_v12, %v681_v12 }
 0x483   : > { %v1266_v24 = vsel %vm474_vm1, %v1265_v16, %v682_v13  ;;  %v1272_v8 = vsel %vm474_vm1, %v1271_v17, %v684_v14  ;;  %v1285_v9 = vrot.slane %v687_v18, 4  ;;  %v1291_v25 = vrot.slane %v689_v19, 4 }
 0x484   : > { %v1276_v4 = vperm.slane %v1272_v8, %v2418_v21  ;;  %v1270_v30 = vperm.slane %v1266_v24, %v2418_v21 }
 0x485   : > { %v1286_v26 = vsel %vm474_vm1, %v1285_v9, %v683_v20  ;;  %v1292_v27 = vsel %vm474_vm1, %v1291_v25, %v685_v23 }
 0x486   : > { %v1277_v31 = vrot.slane %v1276_v4, 4  ;;  %v1296_v32 = vperm.slane %v1292_v27, %v2418_v21  ;;  %v1290_v34 = vperm.slane %v1286_v26, %v2418_v21 }
 0x488   : > { %v1278_v33 = vsel %vm474_vm1, %v1277_v31, %v1270_v30  ;;  %v1297_v36 = vrot.slane %v1296_v32, 4 }
 0x489   : > { %v1282_v37 = vperm.slane %v1278_v33, %v2428_v35 }
 0x48a   : > { %v1298_v38 = vsel %vm474_vm1, %v1297_v36, %v1290_v34 }
 0x48b   : > { %v1302_v39 = vperm.slane %v1298_v38, %v2428_v35  ;;  %v1283_v40 = vrot.slane %v1282_v37, 4  ;;  %v1308_v41 = vshrl.u32 %v1282_v37, 16 }
 0x48d   : > { %v1307_v42 = vpack.i.b16 %v1302_v39, %v1282_v37  ;;  %v1309_v43 = vshrl.u32 %v1302_v39, 16  ;;  %v1284_v44 = vsel %vm474_vm1, 0, %v1283_v40  ;;  %v1303_v45 = vrot.slane %v1302_v39, 4 }
 0x48e   : > { %v1314_v50 = vshrl.u32 %v1284_v44, 16 }
 0x48f   : > { %v1321_v46 = vsel %vm1143_vm2, %v1307_v42, 0  ;;  %v1310_v47 = vpack.i.b16 %v1309_v43, %v1308_v41  ;;  %v1304_v48 = vsel %vm474_vm1, 0, %v1303_v45 }
 0x490   : > { %1330 = vmatpush.bf16.msrb.mxu2 %v1321_v46  ;;  %v1313_v49 = vpack.i.b16 %v1304_v48, %v1284_v44  ;;  %v1315_v51 = vshrl.u32 %v1304_v48, 16 }
 0x491   : > { %v1340_v52 = vsel %vm1143_vm2, %v1310_v47, 0 }
 0x492   : > { %1349 = vmatpush.bf16.msrb.mxu3 %v1340_v52  ;;  %v1359_v53 = vsel %vm1143_vm2, %v1313_v49, 0  ;;  %v1316_v54 = vpack.i.b16 %v1315_v51, %v1314_v50 }
 0x493   : > { %1368 = vmatpush.bf16.msrb.mxu0 %v1359_v53 }
 0x494   : > { %v1378_v55 = vsel %vm1143_vm2, %v1316_v54, 0 }
 0x495   : > { %1387 = vmatpush.bf16.msra.mxu1 %v1378_v55 }
 0x4c8   : > { %v1243_v56 = vpop.xlane.xlu0 %1242 }
 0x4c9   : > { %1992 = vrcp.f32 %v1243_v56 }
 0x4cf   : > { %v1993_v57 = vpop.eup %1992 }
 0x4d0   : > { %v1257_v58 = vmul.f32 %v1993_v57, %v2534_v22  ;;  %v1246_v59 = vpop.xlane.xlu0 %1245 }
 0x4d1   : > { %1994 = vrcp.f32 %v1246_v59 }
 0x4d2   : > { %v1261_v60 = vpack.c.bf16 %v1257_v58, %v1257_v58 }
 0x4d4   : > { %1811 = vmatmul.msk.bf16.vlgmr.msrb.gmra.mxu2 %vm1139_vm3, %v1261_v60 }
 0x4d7   : > { %v1995_v61 = vpop.eup %1994 }
 0x4d8   : > { %v1258_v62 = vmul.f32 %v1995_v61, %v2538_v6  ;;  %v1249_v63 = vpop.xlane.xlu0 %1248 }
 0x4d9   : > { %1996 = vrcp.f32 %v1249_v63  ;;  %v1252_v0 = vpop.xlane.xlu1 %1251 }
 0x4da   : > { %1998 = vrcp.f32 %v1252_v0  ;;  %v1262_v1 = vpack.c.bf16 %v1258_v62, %v1258_v62 }
 0x4dc   : > { %1812 = vmatmul.msk.bf16.vlgmr.msrb.gmra.mxu3 %vm1139_vm3, %v1262_v1 }
 0x4df   : > { %v1997_v3 = vpop.eup %1996 }
 0x4e0   : > { %v1999_v5 = vpop.eup %1998  ;;  %v1259_v7 = vmul.f32 %v1997_v3, %v2542_v28 }
 0x4e1   : > { %v1260_v22 = vmul.f32 %v1999_v5, %v2544_v29 }
 0x4e2   : > { %v1263_v10 = vpack.c.bf16 %v1259_v7, %v1259_v7 }
 0x4e3   : > { %v1264_v11 = vpack.c.bf16 %v1260_v22, %v1260_v22 }
 0x4e4   : > { %1813 = vmatmul.msk.bf16.vlgmr.msrb.gmra.mxu0 %vm1139_vm3, %v1263_v10 }
 0x4e5   : > { %1814 = vmatmul.msk.bf16.vlgmr.msra.gmra.mxu1 %vm1139_vm3, %v1264_v11 }
 0x557   : > { %v1332_v6 = vpop.f32.mrf.mxu2 }
 0x558   : > { %v1395_v14 = vrot.slane %v1332_v6, 4 }
 0x55f   : > { %v1334_v12 = vpop.f32.mrf.mxu2  ;;  %v1351_v13 = vpop.f32.mrf.mxu3 }
 0x560   : > { %v1407_v15 = vrot.slane %v1351_v13, 4 }
 0x561   : > { %v1370_v16 = vpop.f32.mrf.mxu0 }
 0x562   : > { %v1393_v17 = vrot.slane %v1370_v16, 4  ;;  %v1396_v18 = vsel %vm474_vm1, %v1370_v16, %v1395_v14  ;;  %v1389_v19 = vpop.f32.mrf.mxu1 }
 0x563   : > { %v1404_v28 = vperm.slane %v1396_v18, %v2418_v21  ;;  %v1405_v20 = vrot.slane %v1389_v19, 4  ;;  %v1408_v29 = vsel %vm474_vm1, %v1389_v19, %v1407_v15 }
 0x564   : > { %v1394_v23 = vsel %vm474_vm1, %v1393_v17, %v1332_v6  ;;  %v1416_v24 = vperm.slane %v1408_v29, %v2418_v21 }
 0x565   : > { %v1400_v8 = vperm.slane %v1394_v23, %v2418_v21  ;;  %v1431_v9 = vrot.slane %v1404_v28, 4  ;;  %v1406_v25 = vsel %vm474_vm1, %v1405_v20, %v1351_v13 }
 0x566   : > { %v1412_v4 = vperm.slane %v1406_v25, %v2418_v21  ;;  %v1429_v26 = vrot.slane %v1416_v24, 4 }
 0x567   : > { %v1419_v27 = vrot.slane %v1400_v8, 4  ;;  %v1432_v30 = vsel %vm474_vm1, %v1416_v24, %v1431_v9  ;;  %v1353_v31 = vpop.f32.mrf.mxu3  ;;  %v2217_v9 = vmov 32.0  }
 0x568   : > { %v1417_v32 = vrot.slane %v1412_v4, 4  ;;  %v1430_v33 = vsel %vm474_vm1, %v1429_v26, %v1404_v28  ;;  %v1440_v34 = vperm.slane %v1432_v30, %v2428_v35  ;;  %2000 = vrcp.f32 %v2217_v9 }
 0x569   : > { %v1420_v36 = vsel %vm474_vm1, %v1412_v4, %v1419_v27  ;;  %v1436_v37 = vperm.slane %v1430_v33, %v2428_v35  ;;  %v1372_v38 = vpop.f32.mrf.mxu0 }
 0x56a   : > { %v1418_v39 = vsel %vm474_vm1, %v1417_v32, %v1400_v8  ;;  %v1428_v40 = vperm.slane %v1420_v36, %v2428_v35  ;;  %v1447_v41 = vrot.slane %v1440_v34, 4  ;;  %v1391_v42 = vpop.f32.mrf.mxu1  ;;  %v1839_v38 = vld [vmem:[#allocation7] sm:$0xff] }
 0x56b   : > { %v1424_v43 = vperm.slane %v1418_v39, %v2428_v35  ;;  %v1445_v44 = vrot.slane %v1436_v37, 4  ;;  %v1842_v39 = vld [vmem:[#allocation8 + $0x8] sm:$0xff]  ;;  %v1841_v42 = vld [vmem:[#allocation8] sm:$0xff] }
 0x56c   : > { %v1443_v45 = vrot.slane %v1428_v40, 4  ;;  %v1448_v46 = vsel %vm474_vm1, 0.0, %v1447_v41  ;;  %v1460_v47 = vsel %vm474_vm1, %v1447_v41, %v1436_v37  ;;  %1628 = vmatpush.bf16.msra.mxu3 %v1842_v39 }
 0x56d   : > { %v1441_v48 = vrot.slane %v1424_v43, 4  ;;  %v1446_v49 = vsel %vm474_vm1, 0.0, %v1445_v44  ;;  %v1464_v50 = vperm.slane %v1460_v47, %v2418_v21  ;;  %v1465_v51 = vrot.slane %v1448_v46, 4 }
 0x56e   : > { %v1444_v52 = vsel %vm474_vm1, 0.0, %v1443_v45  ;;  %v1449_v53 = vsel %vm474_vm1, %v1443_v45, %v1424_v43  ;;  %v2001_v25 = vpop.eup %2000 }
 0x56f   : > { %v1454_v54 = vrot.slane %v1444_v52, 4  ;;  %v1442_v55 = vsel %vm474_vm1, 0.0, %v1441_v48  ;;  %v1453_v56 = vperm.slane %v1449_v53, %v2418_v21  ;;  %v1466_v57 = vsel %vm474_vm1, %v1465_v51, %v1446_v49  ;;  %v1979_v52 = vld [vmem:[%s2701_s3] ss:$0 sm:$0xff] }
 0x570   : > { %v1470_v58 = vperm.slane %v1466_v57, %v2418_v21  ;;  %v1485_v59 = vrot.slane %v1464_v50, 4  ;;  %v1527_v4 = vmul.f32 32.0, %v2001_v25  ;;  %vm1531_vm6 = vweird.f32 %v2001_v25  ;;  %1629 = vmatpush.bf16.msra.mxu3 %v1841_v42  ;;  %v1980_v57 = vld [vmem:[%s2703_s5] ss:$0 sm:$0xff] }
 0x571   : > { %v1455_v60 = vsel %vm474_vm1, %v1454_v54, %v1442_v55  ;;  %v1473_v61 = vrot.slane %v1453_v56, 4 }
 0x572   : > { %v1459_v62 = vperm.slane %v1455_v60, %v2418_v21  ;;  %v1486_v63 = vsel %vm474_vm1, %v1470_v58, %v1485_v59  ;;  %v1483_v0 = vrot.slane %v1470_v58, 4  ;;  %v1528_v26 = vsub.f32 1.0, %v1527_v4 }
 0x573   : > { %v1494_v1 = vperm.slane %v1486_v63, %v2428_v35  ;;  %v1981_v63 = vld [vmem:[%s2705_s7] ss:$0 sm:$0xff] }
 0x574   : > { %v1474_v3 = vsel %vm474_vm1, %v1459_v62, %v1473_v61  ;;  %v1471_v5 = vrot.slane %v1459_v62, 4  ;;  %v1484_v7 = vsel %vm474_vm1, %v1483_v0, %v1464_v50  ;;  %v1529_v27 = vmul.f32 %v2001_v25, %v1528_v26  ;;  %v1978_v50 = vld [vmem:[%s2700_s2] ss:$0 sm:$0xff] }
 0x575   : > { %v1482_v22 = vperm.slane %v1474_v3, %v2428_v35  ;;  %v1499_v10 = vrot.slane %v1494_v1, 4  ;;  %v1490_v11 = vperm.slane %v1484_v7, %v2428_v35 }
 0x576   : > { %v1472_v6 = vsel %vm474_vm1, %v1471_v5, %v1453_v56  ;;  %v1530_v30 = vadd.f32 %v2001_v25, %v1529_v27 }
 0x577   : > { %v1500_v12 = vsel %vm474_vm1, %v1499_v10, %v1482_v22  ;;  %v1478_v21 = vperm.slane %v1472_v6, %v2428_v35  ;;  %v1495_v13 = vrot.slane %v1490_v11, 4  ;;  %v1501_v17 = vrot.slane %v1482_v22, 4 }
 0x578   : > { %1508 = vrot.lane.b32.xlu0 %v1500_v12, %s2214_s29  ;;  %v1532_v31 = vsel %vm1531_vm6, %v2001_v25, %v1530_v30 }
 0x579   : > { %v1497_v14 = vrot.slane %v1478_v21, 4  ;;  %v1496_v15 = vsel %vm474_vm1, %v1495_v13, %v1478_v21  ;;  %v1502_v18 = vsel %vm474_vm1, %v1494_v1, %v1501_v17 }
 0x57b   : > { %v1498_v16 = vsel %vm474_vm1, %v1490_v11, %v1497_v14 }
 0x57c   : > { %1504 = vrot.lane.b32.xlu2 %v1498_v16, %s2215_s25 }
 0x584   : > { %1512 = vrot.lane.b32.xlu2 %v1502_v18, %s2216_s18 }
 0x5d6   : > { %v1505_v19 = vpop.permute.xlu2 %1504 }
 0x5d7   : > { %v1515_v35 = vsel %vm1139_vm3, %v1496_v15, %v1505_v19 }
 0x5de   : > { %v1513_v20 = vpop.permute.xlu2 %1512 }
 0x5ea   : > { %v1509_v28 = vpop.permute.xlu0 %1508 }
 0x5eb   : > { %v1517_v29 = vsel %vm1516_vm4, %v1515_v35, %v1509_v28  ;;  %v1982_v28 = vld [vmem:[%s2706_s8] ss:$0 sm:$0xff] }
 0x5ec   : > { %v1519_v23 = vsel %vm1518_vm5, %v1517_v29, %v1513_v20 }
 0x5ed   : > { %v1520_v24 = vadd.f32 %v1519_v23, %v2398_v2  ;;  %v1840_v2 = vld [vmem:[#allocation7 + $0x8] sm:$0xff]  ;;  %v1983_v23 = vld [vmem:[%s2707_s9] ss:$0 sm:$0xff] }
 0x5ee   : > { %1590 = vmatpush.bf16.msra.mxu2 %v1840_v2 }
 0x5ef   : > { %v1523_v8 = vsel %vm446_vm0, %v1520_v24, 0.0 }
 0x5f0   : > { %1524 = vadd.xlane.f32.xlu2 %v1523_v8 }
 0x5f2   : > { %1591 = vmatpush.bf16.msra.mxu2 %v1839_v38 }
 0x663   : > { %v1525_v32 = vpop.xlane.xlu2 %1524 }
 0x664   : > { %v1533_v33 = vmul.f32 %v1532_v31, %v1525_v32 }
 0x666   : > { %v1534_v34 = vsub.f32 %v1520_v24, %v1533_v33 }
 0x668   : > { %v1535_v36 = vmul.f32 %v1534_v34, %v1534_v34 }
 0x66a   : > { %v1536_v37 = vsel %vm446_vm0, %v1535_v36, 0.0 }
 0x66b   : > { %1537 = vadd.xlane.f32.xlu0 %v1536_v37 }
 0x6de   : > { %v1538_v40 = vpop.xlane.xlu0 %1537 }
 0x6df   : > { %v1539_v41 = vmul.f32 %v1538_v40, %v1532_v31 }
 0x6e1   : > { %v1540_v43 = vadd.f32 1e-05, %v1539_v41 }
 0x6e3   : > { %2002 = vrsqrt.f32 %v1540_v43  ;;  %vm1547_vm8 = vweird.f32 %v1540_v43 }
 0x6e9   : > { %v2003_v44 = vpop.eup %2002 }
 0x6ea   : > { %v1542_v45 = vmul.f32 %v2003_v44, %v1540_v43  ;;  %vm1548_vm7 = vweird.f32 %v2003_v44 }
 0x6eb   : > { %vm1549_vm9 = vmor %vm1547_vm8, %vm1548_vm7 }
 0x6ec   : > { %v1543_v46 = vmul.f32 %v2003_v44, %v1542_v45 }
 0x6ee   : > { %v1544_v47 = vmul.f32 0.5, %v1543_v46 }
 0x6f0   : > { %v1545_v48 = vsub.f32 1.5, %v1544_v47 }
 0x6f2   : > { %v1546_v49 = vmul.f32 %v2003_v44, %v1545_v48 }
 0x6f4   : > { %v1550_v51 = vsel %vm1549_vm9, %v2003_v44, %v1546_v49 }
 0x6f5   : > { %v1551_v53 = vmul.f32 %v1550_v51, %v1534_v34 }
 0x6f7   : > { %v1555_v54 = vmul.f32 %v1978_v50, %v1551_v53 }
 0x6f9   : > { %v1559_v55 = vadd.f32 %v1979_v52, %v1555_v54 }
 0x6fb   : > { %v1560_v56 = vpack.c.bf16 %v1559_v55, %v1559_v55 }
 0x6fd   : > { %1823 = vmatmul.msk.bf16.vlgmr.msra.gmra.mxu2 %vm446_vm0, %v1560_v56 }
 0x780   : > { %v1593_v58 = vpop.f32.mrf.mxu2 }
 0x781   : > { %v1594_v59 = vadd.f32 %v1980_v57, %v1593_v58 }
 0x783   : > { %v1597_v60 = vmax.f32 %v1594_v59, 0.0 }
 0x785   : > { %v1598_v61 = vpack.c.bf16 %v1597_v60, %v1597_v60 }
 0x787   : > { %1832 = vmatmul.msk.bf16.vlgmr.msra.gmra.mxu3 %vm446_vm0, %v1598_v61 }
 0x788   : > { %v1595_v62 = vpop.f32.mrf.mxu2 }
 0x80a   : > { %v1631_v0 = vpop.f32.mrf.mxu3 }
 0x80b   : > { %v1632_v1 = vadd.f32 %v1981_v63, %v1631_v0 }
 0x80d   : > { %v1635_v3 = vadd.f32 %v1632_v1, %v1559_v55 }
 0x80f   : > { %v1638_v5 = vsel %vm446_vm0, %v1635_v3, 0.0 }
 0x810   : > { %1639 = vadd.xlane.f32.xlu1 %v1638_v5 }
 0x812   : > { %v1633_v7 = vpop.f32.mrf.mxu3 }
 0x883   : > { %v1640_v22 = vpop.xlane.xlu1 %1639 }
 0x884   : > { %v1641_v10 = vmul.f32 %v1640_v22, %v1532_v31 }
 0x886   : > { %v1642_v11 = vsub.f32 %v1635_v3, %v1641_v10 }
 0x888   : > { %v1643_v6 = vmul.f32 %v1642_v11, %v1642_v11 }
 0x88a   : > { %v1644_v12 = vsel %vm446_vm0, %v1643_v6, 0.0 }
 0x88b   : > { %1645 = vadd.xlane.f32.xlu1 %v1644_v12 }
 0x8fe   : > { %v1646_v21 = vpop.xlane.xlu1 %1645 }
 0x8ff   : > { %v1647_v13 = vmul.f32 %v1646_v21, %v1532_v31 }
 0x901   : > { %v1648_v14 = vadd.f32 1e-05, %v1647_v13 }
 0x903   : > { %2004 = vrsqrt.f32 %v1648_v14  ;;  %vm1655_vm11 = vweird.f32 %v1648_v14 }
 0x909   : > { %v2005_v15 = vpop.eup %2004 }
 0x90a   : > { %v1650_v16 = vmul.f32 %v2005_v15, %v1648_v14  ;;  %vm1656_vm10 = vweird.f32 %v2005_v15 }
 0x90b   : > { %vm1657_vm12 = vmor %vm1655_vm11, %vm1656_vm10 }
 0x90c   : > { %v1651_v17 = vmul.f32 %v2005_v15, %v1650_v16 }
 0x90e   : > { %v1652_v18 = vmul.f32 0.5, %v1651_v17 }
 0x910   : > { %v1653_v19 = vsub.f32 1.5, %v1652_v18 }
 0x912   : > { %v1654_v35 = vmul.f32 %v2005_v15, %v1653_v19 }
 0x914   : > { %v1658_v20 = vsel %vm1657_vm12, %v2005_v15, %v1654_v35 }
 0x915   : > { %v1659_v29 = vmul.f32 %v1658_v20, %v1642_v11 }
 0x917   : > { %v1663_v24 = vmul.f32 %v1982_v28, %v1659_v29 }
 0x919   : > { %v1667_v8 = vadd.f32 %v1983_v23, %v1663_v24 }
 0x91b   : > { %1668 = vst.msk [vmem:[%s426_s20] sm:$0xff] %vm446_vm0, %v1667_v8 }
 0x91c   : > { %2153 = shalt.err (!%p2150_p9)
}
 0x91d   : > { %1857 = dma.vmem_to_hbm [thread:$0]  (%p2349_p13), %s1683_s17, 128, %s1685_s6, %s1670_s1  }
 0x91e PF: > { %s1696_s30 = sand.u32 1, %s2188_s13   ;;  %p2722_p10 = scmp.ge.s32.totalorder %s2200_s16, 2 }
 0x91f   : > { %s1697_s18 = scalar_lea.sflag [#allocation4], %s1696_s30 }
 0x920   : > { %p1874_p11 = pnand %p2722_p10, %p2354_p4 }
 0x922   : > { %p1875_p0 = pneg %p1874_p11 }
 0x924   : > { %2183 = dma.done.wait (%p1875_p0), %s1697_s18, 128  }
 0x925   : > { %2185 = vsyncadd (%p1875_p0), %s1697_s18, 4294967168  ;;  %s2723_s12 = sld [smem:[#allocation15_spill]]  ;;  %p25_p2 = scmp.ge.s32.totalorder %s2329_s28, 4  }
 0x926   : > { %s2724_s13 = smov %s2192_s14  ;;  %s2725_s14 = smov %s2196_s15 }
 0x927   : > { %s2727_s16 = smov %s2329_s28  ;;  %27 = sbr.rel (!%p25_p2) target bundleno = 11 (0xb), region = 117 }
 0x92b   : > { %s2726_s15 = smov %s2723_s12 }
 0x92c   :  { %1703 = vsyncpa [#allocation3], 1 }
 0x92d   :  { %1705 = vsyncpa [#allocation3 + $0x1], 1 }
 0x92e   :  { %1706 = vsyncpa [#allocation6], 1 }
 0x92f   :  { %1707 = vsyncpa [#allocation9], 1 }
 0x930   :  { %1708 = vsyncpa [#allocation4], 1 }
 0x931   :  { %1710 = vsyncpa [#allocation4 + $0x1], 1 }

</bundles_post_ra>
